<compile_context>
chip_gen: v7x
topology: tpu7x:2x2x1
jax: 0.10.0
libtpu: 0.0.40
codegen_flags: <defaults>
</compile_context>

<pallas_src>
import functools

import jax
import jax.numpy as jnp
from jax import lax
from jax.experimental import pallas as pl
from jax.experimental.pallas import tpu as pltpu

_LANE = 128


def _round_up(x, m):
    return (x + m - 1) // m * m


def _gelu_exact(v):
    # PyTorch nn.GELU() default: 0.5 * x * (1 + erf(x / sqrt(2)))
    return 0.5 * v * (1.0 + lax.erf(v * jnp.float32(0.7071067811865476)))


def _mlp_clip_kernel(x_ref, w1_ref, b1_ref, w2_ref, b2_ref, w3_ref, b3_ref,
                     w4_ref, b4_ref, o_ref, *, clip_lo, clip_hi):
    x = x_ref[...]                                                   # (TB, C)
    h = _gelu_exact(jnp.dot(x, w1_ref[...],
                            preferred_element_type=jnp.float32) + b1_ref[...])
    h = _gelu_exact(jnp.dot(h, w2_ref[...],
                            preferred_element_type=jnp.float32) + b2_ref[...])
    h = _gelu_exact(jnp.dot(h, w3_ref[...],
                            preferred_element_type=jnp.float32) + b3_ref[...])
    y = jnp.dot(h, w4_ref[...], preferred_element_type=jnp.float32) + b4_ref[...]
    # nn.Hardtanh(-clip_min, clip_max)
    o_ref[...] = jnp.clip(y, jnp.float32(clip_lo), jnp.float32(clip_hi))


def offset0_model_mse_clip_forward(x, params, *, clip_min=1.0, clip_max=1.0,
                                   batch_tile=256):
    """x: (B, num_neurons, 1) float32 (PyTorch NCT layout). Returns (B, num_output)."""
    w1, b1, w2, b2, w3, b3, w4, b4 = params
    B, C, T = x.shape
    assert T == 1, "Offset(0,1) model expects a single-sample receptive field"
    D = w4.shape[1]

    x2d = x[:, :, 0].astype(jnp.float32)                             # (B, C)

    # ---- Lane-pad feature dims to multiples of 128 (exact under zero pad). ---
    h1, h2, h3 = w1.shape[1], w2.shape[1], w3.shape[1]
    h1p, h2p, h3p, Dp = (_round_up(v, _LANE) for v in (h1, h2, h3, D))

    def pad2(a, rows, cols):
        return jnp.pad(a, ((0, rows - a.shape[0]), (0, cols - a.shape[1])))

    w1p, b1p = pad2(w1, C,   h1p), pad2(b1, 1, h1p)
    w2p, b2p = pad2(w2, h1p, h2p), pad2(b2, 1, h2p)
    w3p, b3p = pad2(w3, h2p, h3p), pad2(b3, 1, h3p)
    w4p, b4p = pad2(w4, h3p, Dp),  pad2(b4, 1, Dp)

    # ---- Tile sizing: large, MXU-aligned, VMEM-capped batch tiles. -----------
    batch_tile = int(batch_tile)
    # Keep the double-buffered x tile (2 * tile * C * 4B) under ~24 MiB so the
    # same config also fits v7x's smaller VMEM when num_neurons is large.
    batch_tile = min(batch_tile, max(8, ((24 << 20) // (8 * C)) // 8 * 8))
    batch_tile = min(batch_tile, _round_up(B, 8))     # don't over-pad tiny batches
    batch_tile = max(8, _round_up(batch_tile, 8))     # (8,128) sublane alignment
    Bp = _round_up(B, batch_tile)
    if Bp != B:
        x2d = jnp.pad(x2d, ((0, Bp - B), (0, 0)))
    grid = (Bp // batch_tile,)

    kernel = functools.partial(_mlp_clip_kernel,
                               clip_lo=-float(clip_min),
                               clip_hi=float(clip_max))

    # Weights/biases: constant block index -> DMA'd once, resident in VMEM.
    resident = lambda arr: pl.BlockSpec(arr.shape, lambda i: (0, 0))

    # ---- Scheduling hints: cost estimate + explicit VMEM limit. --------------
    flops = 2 * Bp * (C * h1p + h1p * h2p + h2p * h3p + h3p * Dp)
    transcendentals = Bp * (h1p + h2p + h3p)                         # one erf / GELU
    weight_bytes = 4 * (C * h1p + h1p + h1p * h2p + h2p
                        + h2p * h3p + h3p + h3p * Dp + Dp)
    bytes_accessed = 4 * Bp * (C + Dp) + weight_bytes

    io_tile_bytes = 4 * batch_tile * (C + Dp)
    work_bytes = 4 * batch_tile * (h1p + h2p + h3p)
    vmem_limit = int(min(32 << 20,
                         max(8 << 20,
                             4 * (2 * io_tile_bytes + 2 * weight_bytes
                                  + work_bytes))))

    out_padded = pl.pallas_call(
        kernel,
        out_shape=jax.ShapeDtypeStruct((Bp, Dp), jnp.float32),
        grid_spec=pltpu.PrefetchScalarGridSpec(
            num_scalar_prefetch=0,
            grid=grid,
            in_specs=[
                pl.BlockSpec((batch_tile, C), lambda i: (i, 0)),     # x tile
                resident(w1p), resident(b1p),
                resident(w2p), resident(b2p),
                resident(w3p), resident(b3p),
                resident(w4p), resident(b4p),
            ],
            out_specs=pl.BlockSpec((batch_tile, Dp), lambda i: (i, 0)),
        ),
        compiler_params=pltpu.CompilerParams(
            dimension_semantics=("parallel",),    # batch tiles across TCs (v7x)
            vmem_limit_bytes=vmem_limit),
        cost_estimate=pl.CostEstimate(flops=flops,
                                      transcendentals=transcendentals,
                                      bytes_accessed=bytes_accessed),
    )(x2d, w1p, b1p, w2p, b2p, w3p, b3p, w4p, b4p)

    # Drop batch padding and the zero-padded output lanes.
    return out_padded[:B, :D]


def _init_linear(key, fan_in, fan_out):
    # Deterministic analogue of PyTorch's default Linear init:
    # U(-1/sqrt(fan_in), 1/sqrt(fan_in)) for both weight and bias.
    kw, kb = jax.random.split(key)
    bound = 1.0 / jnp.sqrt(jnp.float32(fan_in))
    # Stored already transposed: (in, out), so kernel does x @ W.
    w = jax.random.uniform(kw, (fan_in, fan_out), jnp.float32, -bound, bound)
    b = jax.random.uniform(kb, (1, fan_out), jnp.float32, -bound, bound)
    return w, b


def make_params(key, num_neurons, num_output):
    k1, k2, k3, k4 = jax.random.split(key, 4)
    h1 = num_output * 30
    h2 = num_output * 30
    h3 = num_output * 10
    w1, b1 = _init_linear(k1, num_neurons, h1)
    w2, b2 = _init_linear(k2, h1, h2)
    w3, b3 = _init_linear(k3, h2, h3)
    w4, b4 = _init_linear(k4, h3, num_output)
    return (w1, b1, w2, b2, w3, b3, w4, b4)


def _reference_forward(x, params, clip_min, clip_max):
    w1, b1, w2, b2, w3, b3, w4, b4 = params
    h = x[:, :, 0]
    h = _gelu_exact(h @ w1 + b1)
    h = _gelu_exact(h @ w2 + b2)
    h = _gelu_exact(h @ w3 + b3)
    y = h @ w4 + b4
    return jnp.clip(y, -clip_min, clip_max)


if __name__ == "__main__":
    num_neurons = 16       # input channels
    num_output = 4         # embedding dimension
    batch = 300            # deliberately NOT a multiple of the 256-row tile
    clip_min, clip_max = 1.0, 1.0   # Hardtanh(-1, 1)

    key = jax.random.PRNGKey(0)
    kx, kp = jax.random.split(key)
    x = jax.random.normal(kx, (batch, num_neurons, 1), jnp.float32)
    params = make_params(kp, num_neurons, num_output)

    out = offset0_model_mse_clip_forward(
        x, params, clip_min=clip_min, clip_max=clip_max, batch_tile=256)
    out = jax.block_until_ready(out)

    ref = _reference_forward(x, params, clip_min, clip_max)
    assert out.shape == (batch, num_output)
    assert jnp.allclose(out, ref, atol=1e-5, rtol=1e-5), "mismatch vs reference"
    print("KERNEL_OK")
</pallas_src>

<mosaic_0001>
module attributes {stable_mosaic.version = 11 : i64} {
  func.func @_mlp_clip_kernel(%arg0: i32, %arg1: memref<256x16xf32, #tpu.memory_space<vmem>>, %arg2: memref<16x128xf32, #tpu.memory_space<vmem>>, %arg3: memref<1x128xf32, #tpu.memory_space<vmem>>, %arg4: memref<128x128xf32, #tpu.memory_space<vmem>>, %arg5: memref<1x128xf32, #tpu.memory_space<vmem>>, %arg6: memref<128x128xf32, #tpu.memory_space<vmem>>, %arg7: memref<1x128xf32, #tpu.memory_space<vmem>>, %arg8: memref<128x128xf32, #tpu.memory_space<vmem>>, %arg9: memref<1x128xf32, #tpu.memory_space<vmem>>, %arg10: memref<256x128xf32, #tpu.memory_space<vmem>>) attributes {dimension_semantics = [#tpu.dimension_semantics<parallel>], iteration_bounds = array<i64: 2>, scalar_prefetch = 0 : i64, scratch_operands = 0 : i64, tpu.core_type = #tpu.core_type<tc>, window_params = [{transform_indices = @transform_0, window_bounds = array<i64: 256, 16>}, {pipeline_mode = #tpu.pipeline_mode<synchronous>, transform_indices = @transform_1, window_bounds = array<i64: 16, 128>}, {pipeline_mode = #tpu.pipeline_mode<synchronous>, transform_indices = @transform_2, window_bounds = array<i64: 1, 128>}, {pipeline_mode = #tpu.pipeline_mode<synchronous>, transform_indices = @transform_3, window_bounds = array<i64: 128, 128>}, {pipeline_mode = #tpu.pipeline_mode<synchronous>, transform_indices = @transform_4, window_bounds = array<i64: 1, 128>}, {pipeline_mode = #tpu.pipeline_mode<synchronous>, transform_indices = @transform_5, window_bounds = array<i64: 128, 128>}, {pipeline_mode = #tpu.pipeline_mode<synchronous>, transform_indices = @transform_6, window_bounds = array<i64: 1, 128>}, {pipeline_mode = #tpu.pipeline_mode<synchronous>, transform_indices = @transform_7, window_bounds = array<i64: 128, 128>}, {pipeline_mode = #tpu.pipeline_mode<synchronous>, transform_indices = @transform_8, window_bounds = array<i64: 1, 128>}, {transform_indices = @transform_9, window_bounds = array<i64: 256, 128>}]} {
    %c0 = arith.constant 0 : index
    %c0_0 = arith.constant 0 : index
    %0 = vector.load %arg1[%c0, %c0_0] : memref<256x16xf32, #tpu.memory_space<vmem>>, vector<256x16xf32>
    %c0_1 = arith.constant 0 : index
    %c0_2 = arith.constant 0 : index
    %1 = vector.load %arg2[%c0_1, %c0_2] : memref<16x128xf32, #tpu.memory_space<vmem>>, vector<16x128xf32>
    %cst = arith.constant dense<0.000000e+00> : vector<256x128xf32>
    %2 = tpu.matmul %0, %1, %cst {dimension_numbers = #tpu.dot_dimension_numbers<[1], [0], [0], [1], [0, 0, 1, 1], [], []>} : vector<256x16xf32>, vector<16x128xf32>, vector<256x128xf32> -> vector<256x128xf32>
    %c0_3 = arith.constant 0 : index
    %c0_4 = arith.constant 0 : index
    %3 = vector.load %arg3[%c0_3, %c0_4] : memref<1x128xf32, #tpu.memory_space<vmem>>, vector<1x128xf32>
    %4 = vector.broadcast %3 : vector<1x128xf32> to vector<256x128xf32>
    %5 = arith.addf %2, %4 : vector<256x128xf32>
    %cst_5 = arith.constant 5.000000e-01 : f32
    %6 = vector.broadcast %cst_5 : f32 to vector<256x128xf32>
    %7 = arith.mulf %6, %5 : vector<256x128xf32>
    %cst_6 = arith.constant 0.707106769 : f32
    %8 = vector.broadcast %cst_6 : f32 to vector<256x128xf32>
    %9 = arith.mulf %5, %8 : vector<256x128xf32>
    %10 = math.erf %9 : vector<256x128xf32>
    %cst_7 = arith.constant 1.000000e+00 : f32
    %11 = vector.broadcast %cst_7 : f32 to vector<256x128xf32>
    %12 = arith.addf %11, %10 : vector<256x128xf32>
    %13 = arith.mulf %7, %12 : vector<256x128xf32>
    %c0_8 = arith.constant 0 : index
    %c0_9 = arith.constant 0 : index
    %14 = vector.load %arg4[%c0_8, %c0_9] : memref<128x128xf32, #tpu.memory_space<vmem>>, vector<128x128xf32>
    %cst_10 = arith.constant dense<0.000000e+00> : vector<256x128xf32>
    %15 = tpu.matmul %13, %14, %cst_10 {dimension_numbers = #tpu.dot_dimension_numbers<[1], [0], [0], [1], [0, 0, 1, 1], [], []>} : vector<256x128xf32>, vector<128x128xf32>, vector<256x128xf32> -> vector<256x128xf32>
    %c0_11 = arith.constant 0 : index
    %c0_12 = arith.constant 0 : index
    %16 = vector.load %arg5[%c0_11, %c0_12] : memref<1x128xf32, #tpu.memory_space<vmem>>, vector<1x128xf32>
    %17 = vector.broadcast %16 : vector<1x128xf32> to vector<256x128xf32>
    %18 = arith.addf %15, %17 : vector<256x128xf32>
    %cst_13 = arith.constant 5.000000e-01 : f32
    %19 = vector.broadcast %cst_13 : f32 to vector<256x128xf32>
    %20 = arith.mulf %19, %18 : vector<256x128xf32>
    %cst_14 = arith.constant 0.707106769 : f32
    %21 = vector.broadcast %cst_14 : f32 to vector<256x128xf32>
    %22 = arith.mulf %18, %21 : vector<256x128xf32>
    %23 = math.erf %22 : vector<256x128xf32>
    %cst_15 = arith.constant 1.000000e+00 : f32
    %24 = vector.broadcast %cst_15 : f32 to vector<256x128xf32>
    %25 = arith.addf %24, %23 : vector<256x128xf32>
    %26 = arith.mulf %20, %25 : vector<256x128xf32>
    %c0_16 = arith.constant 0 : index
    %c0_17 = arith.constant 0 : index
    %27 = vector.load %arg6[%c0_16, %c0_17] : memref<128x128xf32, #tpu.memory_space<vmem>>, vector<128x128xf32>
    %cst_18 = arith.constant dense<0.000000e+00> : vector<256x128xf32>
    %28 = tpu.matmul %26, %27, %cst_18 {dimension_numbers = #tpu.dot_dimension_numbers<[1], [0], [0], [1], [0, 0, 1, 1], [], []>} : vector<256x128xf32>, vector<128x128xf32>, vector<256x128xf32> -> vector<256x128xf32>
    %c0_19 = arith.constant 0 : index
    %c0_20 = arith.constant 0 : index
    %29 = vector.load %arg7[%c0_19, %c0_20] : memref<1x128xf32, #tpu.memory_space<vmem>>, vector<1x128xf32>
    %30 = vector.broadcast %29 : vector<1x128xf32> to vector<256x128xf32>
    %31 = arith.addf %28, %30 : vector<256x128xf32>
    %cst_21 = arith.constant 5.000000e-01 : f32
    %32 = vector.broadcast %cst_21 : f32 to vector<256x128xf32>
    %33 = arith.mulf %32, %31 : vector<256x128xf32>
    %cst_22 = arith.constant 0.707106769 : f32
    %34 = vector.broadcast %cst_22 : f32 to vector<256x128xf32>
    %35 = arith.mulf %31, %34 : vector<256x128xf32>
    %36 = math.erf %35 : vector<256x128xf32>
    %cst_23 = arith.constant 1.000000e+00 : f32
    %37 = vector.broadcast %cst_23 : f32 to vector<256x128xf32>
    %38 = arith.addf %37, %36 : vector<256x128xf32>
    %39 = arith.mulf %33, %38 : vector<256x128xf32>
    %c0_24 = arith.constant 0 : index
    %c0_25 = arith.constant 0 : index
    %40 = vector.load %arg8[%c0_24, %c0_25] : memref<128x128xf32, #tpu.memory_space<vmem>>, vector<128x128xf32>
    %cst_26 = arith.constant dense<0.000000e+00> : vector<256x128xf32>
    %41 = tpu.matmul %39, %40, %cst_26 {dimension_numbers = #tpu.dot_dimension_numbers<[1], [0], [0], [1], [0, 0, 1, 1], [], []>} : vector<256x128xf32>, vector<128x128xf32>, vector<256x128xf32> -> vector<256x128xf32>
    %c0_27 = arith.constant 0 : index
    %c0_28 = arith.constant 0 : index
    %42 = vector.load %arg9[%c0_27, %c0_28] : memref<1x128xf32, #tpu.memory_space<vmem>>, vector<1x128xf32>
    %43 = vector.broadcast %42 : vector<1x128xf32> to vector<256x128xf32>
    %44 = arith.addf %41, %43 : vector<256x128xf32>
    %cst_29 = arith.constant -1.000000e+00 : f32
    %cst_30 = arith.constant 1.000000e+00 : f32
    %45 = vector.broadcast %cst_29 : f32 to vector<256x128xf32>
    %46 = arith.maximumf %45, %44 : vector<256x128xf32>
    %47 = vector.broadcast %cst_30 : f32 to vector<256x128xf32>
    %48 = arith.minimumf %47, %46 : vector<256x128xf32>
    %c0_31 = arith.constant 0 : index
    %c0_32 = arith.constant 0 : index
    %49 = vector.load %arg10[%c0_31, %c0_32] : memref<256x128xf32, #tpu.memory_space<vmem>>, vector<256x128xf32>
    tpu.vector_store %arg10[%c0_31, %c0_32], %48 {strides = array<i32>} : memref<256x128xf32, #tpu.memory_space<vmem>>, vector<256x128xf32>,
    return
  }
  func.func @transform_0(%arg0: i32) -> (i32, i32) {
    %c0_i32 = arith.constant 0 : i32
    %c0_i32_0 = arith.constant 0 : i32
    return %arg0, %c0_i32 : i32, i32
  }
  func.func @transform_1(%arg0: i32) -> (i32, i32) {
    %c0_i32 = arith.constant 0 : i32
    %c0_i32_0 = arith.constant 0 : i32
    %c0_i32_1 = arith.constant 0 : i32
    return %c0_i32, %c0_i32_0 : i32, i32
  }
  func.func @transform_2(%arg0: i32) -> (i32, i32) {
    %c0_i32 = arith.constant 0 : i32
    %c0_i32_0 = arith.constant 0 : i32
    %c0_i32_1 = arith.constant 0 : i32
    return %c0_i32, %c0_i32_0 : i32, i32
  }
  func.func @transform_3(%arg0: i32) -> (i32, i32) {
    %c0_i32 = arith.constant 0 : i32
    %c0_i32_0 = arith.constant 0 : i32
    %c0_i32_1 = arith.constant 0 : i32
    return %c0_i32, %c0_i32_0 : i32, i32
  }
  func.func @transform_4(%arg0: i32) -> (i32, i32) {
    %c0_i32 = arith.constant 0 : i32
    %c0_i32_0 = arith.constant 0 : i32
    %c0_i32_1 = arith.constant 0 : i32
    return %c0_i32, %c0_i32_0 : i32, i32
  }
  func.func @transform_5(%arg0: i32) -> (i32, i32) {
    %c0_i32 = arith.constant 0 : i32
    %c0_i32_0 = arith.constant 0 : i32
    %c0_i32_1 = arith.constant 0 : i32
    return %c0_i32, %c0_i32_0 : i32, i32
  }
  func.func @transform_6(%arg0: i32) -> (i32, i32) {
    %c0_i32 = arith.constant 0 : i32
    %c0_i32_0 = arith.constant 0 : i32
    %c0_i32_1 = arith.constant 0 : i32
    return %c0_i32, %c0_i32_0 : i32, i32
  }
  func.func @transform_7(%arg0: i32) -> (i32, i32) {
    %c0_i32 = arith.constant 0 : i32
    %c0_i32_0 = arith.constant 0 : i32
    %c0_i32_1 = arith.constant 0 : i32
    return %c0_i32, %c0_i32_0 : i32, i32
  }
  func.func @transform_8(%arg0: i32) -> (i32, i32) {
    %c0_i32 = arith.constant 0 : i32
    %c0_i32_0 = arith.constant 0 : i32
    %c0_i32_1 = arith.constant 0 : i32
    return %c0_i32, %c0_i32_0 : i32, i32
  }
  func.func @transform_9(%arg0: i32) -> (i32, i32) {
    %c0_i32 = arith.constant 0 : i32
    %c0_i32_0 = arith.constant 0 : i32
    return %arg0, %c0_i32 : i32, i32
  }
}

</mosaic_0001>

<bundles_post_ra>
// kernel: tpu_custom_call.1
= control target key start
LH: loop header
LB: loop body
LE: loop exit
PB: predicated region body
PF: predicated region fallthrough
CT: control target
= control target key end

     0   :  { %14 = vsyncpa [#allocation3], 0  ;;  %s3875_s0 = inlined_call_operand.vmem [shape: f32[512,16], index: 0, kind: input, shape index: {}]   ;;  %s3876_s1 = inlined_call_operand.vmem [shape: f32[16,128], index: 1, kind: input, shape index: {}]   ;;  %s3877_s2 = inlined_call_operand.vmem [shape: f32[1,128], index: 2, kind: input, shape index: {}]   ;;  %s3878_s3 = inlined_call_operand.vmem [shape: f32[128,128], index: 3, kind: input, shape index: {}]   ;;  %s3879_s4 = inlined_call_operand.vmem [shape: f32[1,128], index: 4, kind: input, shape index: {}]   ;;  %s3880_s5 = inlined_call_operand.vmem [shape: f32[128,128], index: 5, kind: input, shape index: {}]   ;;  %s3881_s6 = inlined_call_operand.vmem [shape: f32[1,128], index: 6, kind: input, shape index: {}]   ;;  %s3882_s7 = inlined_call_operand.vmem [shape: f32[128,128], index: 7, kind: input, shape index: {}]   ;;  %s3883_s8 = inlined_call_operand.vmem [shape: f32[1,128], index: 8, kind: input, shape index: {}]   ;;  %s3884_s9 = inlined_call_operand.hbm [shape: f32[512,128], index: 9, kind: output, shape index: {}]  }
   0x1   :  { %16 = vsyncpa [#allocation3 + $0x1], 0  ;;  %s3110_s30 = smov 0   ;;  %s3112_s10 = smov 0  }
   0x2   :  { %s3114_s11 = smov 0   ;;  %s3116_s12 = smov 0  }
   0x3 LB: > { %s3131_s13 = sadd.s32 4294967295, %s3055_s12   ;;  %s2093_s14 = sadd.s32 4294967294, %s3055_s12   ;;  %s3055_s12 = sphi %s3116_s12, %s3890_s12   ;;  %s3051_s11 = sphi %s3114_s11, %s3889_s11   ;;  %s3047_s10 = sphi %s3112_s10, %s3888_s10   ;;  %s3043_s30 = sphi %s3110_s30, %s3887_s30  }
   0x4   : > { %s3135_s15 = sadd.s32 1, %s3055_s12   ;;  %s223_s16 = sadd.s32 1, %s3051_s11 }
   0x5   : > { %s220_s17 = ssub.s32 %s3055_s12, %s3135_s15  ;;  %p233_p0 = scmp.ne.s32.totalorder %s3051_s11, %s3047_s10 }
   0x6   : > { %p221_p1 = scmp.eq.s32.totalorder %s220_s17, 0  ;;  %p234_p2 = scmp.eq.s32.totalorder %s3131_s13, 1 }
   0x7   : > { %p239_p3 = scmp.ne.s32.totalorder %s3047_s10, %s3043_s30  ;;  %p240_p4 = scmp.eq.s32.totalorder %s2093_s14, 1 }
   0x8   : > { %s3146_s18 = scalar_select %p221_p1, %s3051_s11, %s223_s16  }
   0x9   : > { %p3148_p5 = por %p234_p2, %p233_p0  ;;  %p3152_p6 = por %p240_p4, %p239_p3 }
   0xa   : > { %p2096_p7 = scmp.ge.s32.totalorder %s3055_s12, 1  ;;  %p291_p8 = scmp.lt.s32.totalorder %s3055_s12, 3 }
   0xc   : > { %p292_p9 = pnand %p2096_p7, %p291_p8 }
   0xd   : > { %v366_v0 = vld [vmem:[%s3876_s1] sm:$0xff] (!%p292_p9)  ;;  %v367_v1 = vld [vmem:[%s3876_s1 + $0x8] sm:$0xff] (!%p292_p9)  ;;  %s2098_s25 = sshll.u32 (!%p292_p9), %s3131_s13, 5  ;;  %v859_v5 = vld [vmem:[%s3878_s3 + $0x10] sm:$0xff] (!%p292_p9)  ;;  %vm375_vm0 = vcmask (!%p292_p9), 130048   ;;  %s324_s24 = sand.u32 (!%p292_p9), 1, %s3047_s10  }
   0xe   : > { %295 = sbr.rel (%p292_p9) target bundleno = 1017 (0x3f9), region = 56  ;;  %v857_v2 = vld [vmem:[%s3878_s3] sm:$0xff] (!%p292_p9)  ;;  %v2644_v3 = vpack.c.bf16 (!%p292_p9), %v367_v1, %v366_v0  ;;  %p328_p10 = scmp.lt.s32.totalorder (!%p292_p9), %s2098_s25, 63  ;;  %v858_v4 = vld [vmem:[%s3878_s3 + $0x8] sm:$0xff] (!%p292_p9)  ;;  %v860_v6 = vld [vmem:[%s3878_s3 + $0x18] sm:$0xff] (!%p292_p9) }
   0xf   : > { %v2648_v7 = vpack.c.bf16 (!%p292_p9), %v858_v4, %v857_v2  ;;  %v2652_v8 = vpack.c.bf16 (!%p292_p9), %v860_v6, %v859_v5  ;;  %v861_v9 = vld [vmem:[%s3878_s3 + $0x20] sm:$0xff] (!%p292_p9)  ;;  %v862_v10 = vld [vmem:[%s3878_s3 + $0x28] sm:$0xff] (!%p292_p9)  ;;  %v863_v44 = vld [vmem:[%s3878_s3 + $0x30] sm:$0xff] (!%p292_p9)  ;;  %s2097_s28 = sshll.u32 (!%p292_p9), %s324_s24, 8  ;;  %s3057_s23 = smov (!%p292_p9), [#allocation2]  }
  0x10   : > { %2645 = vmatprep.subr.bf16.mxu0 (!%p292_p9), %v2644_v3  ;;  %v2656_v11 = vpack.c.bf16 (!%p292_p9), %v862_v10, %v861_v9  ;;  %v864_v45 = vld [vmem:[%s3878_s3 + $0x38] sm:$0xff] (!%p292_p9)  ;;  %v865_v47 = vld [vmem:[%s3878_s3 + $0x40] sm:$0xff] (!%p292_p9)  ;;  %v866_v48 = vld [vmem:[%s3878_s3 + $0x48] sm:$0xff] (!%p292_p9)  ;;  %s3759_s29 = scalar_lea.vmem (!%p292_p9), [#allocation2], %s2097_s28  ;;  %s2997_s26 = sshll.u32 (!%p292_p9), %s3057_s23, 4  ;;  %s2998_s26 = int_to_ptr.vmem [resolvable:$false] %s2997_s26 }
  0x11   : > { %2647 = vmatpush3.bf16.msra.mxu0 (!%p292_p9), %v2644_v3  ;;  %2649 = vmatprep.subr.bf16.mxu1 (!%p292_p9), %v2648_v7  ;;  %v2660_v46 = vpack.c.bf16 (!%p292_p9), %v864_v45, %v863_v44  ;;  %v2664_v49 = vpack.c.bf16 (!%p292_p9), %v866_v48, %v865_v47  ;;  %v867_v50 = vld [vmem:[%s3878_s3 + $0x50] sm:$0xff] (!%p292_p9)  ;;  %v868_v51 = vld [vmem:[%s3878_s3 + $0x58] sm:$0xff] (!%p292_p9)  ;;  %v869_v53 = vld [vmem:[%s3878_s3 + $0x60] sm:$0xff] (!%p292_p9) }
  0x12   : > { %2651 = vmatpush3.bf16.msra.mxu1 (!%p292_p9), %v2648_v7  ;;  %v2668_v52 = vpack.c.bf16 (!%p292_p9), %v868_v51, %v867_v50  ;;  %v870_v54 = vld [vmem:[%s3878_s3 + $0x68] sm:$0xff] (!%p292_p9)  ;;  %v871_v56 = vld [vmem:[%s3878_s3 + $0x70] sm:$0xff] (!%p292_p9)  ;;  %v872_v57 = vld [vmem:[%s3878_s3 + $0x78] sm:$0xff] (!%p292_p9) }
  0x13   : > { %2653 = vmatprep.subr.bf16.mxu1 (!%p292_p9), %v2652_v8  ;;  %v2672_v55 = vpack.c.bf16 (!%p292_p9), %v870_v54, %v869_v53  ;;  %v2676_v58 = vpack.c.bf16 (!%p292_p9), %v872_v57, %v871_v56  ;;  %v1265_v59 = vld [vmem:[%s3880_s5] sm:$0xff] (!%p292_p9)  ;;  %v1266_v60 = vld [vmem:[%s3880_s5 + $0x8] sm:$0xff] (!%p292_p9)  ;;  %v1267_v61 = vld [vmem:[%s3880_s5 + $0x10] sm:$0xff] (!%p292_p9) }
  0x14   : > { %v2680_v62 = vpack.c.bf16 (!%p292_p9), %v1266_v60, %v1265_v59  ;;  %v1268_v63 = vld [vmem:[%s3880_s5 + $0x18] sm:$0xff] (!%p292_p9)  ;;  %v1269_v1 = vld [vmem:[%s3880_s5 + $0x20] sm:$0xff] (!%p292_p9)  ;;  %v1270_v2 = vld [vmem:[%s3880_s5 + $0x28] sm:$0xff] (!%p292_p9) }
  0x15   : > { %s3892_s25 = smov (!%p328_p10, %s2098_s25), 63  ;;  %v2684_v0 = vpack.c.bf16 %v1268_v63, %v1267_v61  ;;  %v2688_v3 = vpack.c.bf16 %v1270_v2, %v1269_v1  ;;  %v1271_v4 = vld [vmem:[%s3880_s5 + $0x30] sm:$0xff]  ;;  %v1272_v5 = vld [vmem:[%s3880_s5 + $0x38] sm:$0xff]  ;;  %v1273_v7 = vld [vmem:[%s3880_s5 + $0x40] sm:$0xff] }
  0x16   : > { %s2099_s27 = sshll.u32 %s3892_s25, 3  ;;  %2655 = vmatpush3.bf16.msra.mxu1 %v2652_v8  ;;  %2681 = vmatprep.subr.bf16.mxu0 %v2680_v62  ;;  %v2692_v6 = vpack.c.bf16 %v1272_v5, %v1271_v4  ;;  %v1274_v8 = vld [vmem:[%s3880_s5 + $0x48] sm:$0xff]  ;;  %v1275_v10 = vld [vmem:[%s3880_s5 + $0x50] sm:$0xff]  ;;  %s2031_s25 = sshll.u32 %s3759_s29, 4  ;;  %s3828_s25 = int_to_ptr.vmem [resolvable:$true] %s2031_s25 }
  0x17   : > { %s3186_s14 = scalar_lea.vmem %s3875_s0, %s2099_s27  ;;  %2657 = vmatprep.subr.bf16.mxu1 %v2656_v11  ;;  %v2696_v9 = vpack.c.bf16 %v1274_v8, %v1273_v7  ;;  %s2993_s22 = scalar_lea.vmem %s3828_s25, 4096 }
  0x18   : > { %v334_v12 = vld [vmem:[%s3186_s14] sm:$0xff]  ;;  %v335_v13 = vld [vmem:[%s3186_s14 + $0x8] sm:$0xff]  ;;  %v336_v14 = vld [vmem:[%s3186_s14 + $0x10] sm:$0xff]  ;;  %p2994_p11 = scmp.ne.s32.totalorder %s3828_s25, %s2993_s22  ;;  %s2999_s27 = scalar_lea.vmem %s2998_s26, 8192 }
  0x19   : > { %2356 = vmatprep.mubr.msk.f32.mxu0 %vm375_vm0, %v334_v12  ;;  %v337_v15 = vld [vmem:[%s3186_s14 + $0x18] sm:$0xff]  ;;  %v338_v16 = vld [vmem:[%s3186_s14 + $0x20] sm:$0xff]  ;;  %v339_v17 = vld [vmem:[%s3186_s14 + $0x28] sm:$0xff]  ;;  %p3000_p0 = scmp.lt.s32.totalorder %s3828_s25, %s2998_s26  ;;  %p3001_p1 = scmp.lt.s32.totalorder %s2999_s27, %s2993_s22 }
  0x1a   : > { %2357 = vmatmul.mubr.msk.f32.vlgmr.msra.gmra.mrb[0].mxu0 %vm375_vm0, %v335_v13  ;;  %2659 = vmatpush3.bf16.msra.mxu1 %v2656_v11  ;;  %v340_v18 = vld [vmem:[%s3186_s14 + $0x30] sm:$0xff]  ;;  %v341_v19 = vld [vmem:[%s3186_s14 + $0x38] sm:$0xff]  ;;  %v342_v20 = vld [vmem:[%s3186_s14 + $0x40] sm:$0xff]  ;;  %p2995_p12 = pnand %p2994_p11, %p3148_p5 }
  0x1b   : > { %2359 = vmatprep.mubr.msk.f32.mxu0 %vm375_vm0, %v336_v14  ;;  %v343_v21 = vld [vmem:[%s3186_s14 + $0x48] sm:$0xff]  ;;  %v344_v22 = vld [vmem:[%s3186_s14 + $0x50] sm:$0xff]  ;;  %v345_v23 = vld [vmem:[%s3186_s14 + $0x58] sm:$0xff]  ;;  %2661 = vmatprep.subr.bf16.mxu1 %v2660_v46  ;;  %p3002_p2 = por %p3001_p1, %p3000_p0 }
  0x1c   : > { %v346_v24 = vld [vmem:[%s3186_s14 + $0x60] sm:$0xff]  ;;  %v347_v25 = vld [vmem:[%s3186_s14 + $0x68] sm:$0xff]  ;;  %v348_v26 = vld [vmem:[%s3186_s14 + $0x70] sm:$0xff]  ;;  %2683 = vmatpush3.bf16.msra.mxu0 %v2680_v62  ;;  %p2996_p13 = pneg %p2995_p12 }
  0x1d   : > { %v349_v27 = vld [vmem:[%s3186_s14 + $0x78] sm:$0xff]  ;;  %v350_v28 = vld [vmem:[%s3186_s14 + $0x80] sm:$0xff]  ;;  %v351_v29 = vld [vmem:[%s3186_s14 + $0x88] sm:$0xff]  ;;  %2685 = vmatprep.subr.bf16.mxu0 %v2684_v0 }
  0x1e   : > { %2360 = vmatmul.mubr.msk.f32.gmra.mrb[2].mxu0 %vm375_vm0, %v337_v15  ;;  %v352_v30 = vld [vmem:[%s3186_s14 + $0x90] sm:$0xff]  ;;  %v353_v31 = vld [vmem:[%s3186_s14 + $0x98] sm:$0xff]  ;;  %v354_v32 = vld [vmem:[%s3186_s14 + $0xa0] sm:$0xff]  ;;  %2663 = vmatpush3.bf16.msra.mxu1 %v2660_v46  ;;  %p3003_p3 = pnand %p3002_p2, %p2996_p13 }
  0x1f   : > { %2362 = vmatprep.mubr.msk.f32.mxu0 %vm375_vm0, %v338_v16  ;;  %v355_v33 = vld [vmem:[%s3186_s14 + $0xa8] sm:$0xff]  ;;  %v356_v34 = vld [vmem:[%s3186_s14 + $0xb0] sm:$0xff]  ;;  %v357_v35 = vld [vmem:[%s3186_s14 + $0xb8] sm:$0xff]  ;;  %2665 = vmatprep.subr.bf16.mxu1 %v2664_v49 }
  0x20   : > { %v358_v36 = vld [vmem:[%s3186_s14 + $0xc0] sm:$0xff]  ;;  %v359_v37 = vld [vmem:[%s3186_s14 + $0xc8] sm:$0xff]  ;;  %v360_v38 = vld [vmem:[%s3186_s14 + $0xd0] sm:$0xff]  ;;  %2687 = vmatpush3.bf16.msra.mxu0 %v2684_v0 }
  0x21   : > { %v361_v39 = vld [vmem:[%s3186_s14 + $0xd8] sm:$0xff]  ;;  %v362_v40 = vld [vmem:[%s3186_s14 + $0xe0] sm:$0xff]  ;;  %v363_v41 = vld [vmem:[%s3186_s14 + $0xe8] sm:$0xff]  ;;  %2689 = vmatprep.subr.bf16.mxu0 %v2688_v3 }
  0x22   : > { %2363 = vmatmul.mubr.msk.f32.gmra.mrb[4].mxu0 %vm375_vm0, %v339_v17  ;;  %v364_v42 = vld [vmem:[%s3186_s14 + $0xf0] sm:$0xff]  ;;  %v365_v43 = vld [vmem:[%s3186_s14 + $0xf8] sm:$0xff]  ;;  %2667 = vmatpush3.bf16.msra.mxu1 %v2664_v49  ;;  %v3321_v13 = vld [vmem:[%s3877_s2] ss:$0 sm:$0xff]  ;;  %s2173_s14 = sshll.u32 %s3131_s13, 12  ;;  %s3834_s13 = scalar_lea.sflag [#allocation3], %s324_s24 }
  0x23   : > { %2365 = vmatprep.mubr.msk.f32.mxu0 %vm375_vm0, %v340_v18  ;;  %2669 = vmatprep.subr.bf16.mxu1 %v2668_v52  ;;  %v1276_v11 = vld [vmem:[%s3880_s5 + $0x58] sm:$0xff]  ;;  %s3826_s21 = scalar_lea.hbm %s3884_s9, %s2173_s14 }
  0x24   : > { %2691 = vmatpush3.bf16.msra.mxu0 %v2688_v3  ;;  %v2700_v12 = vpack.c.bf16 %v1276_v11, %v1275_v10 }
  0x25   : > { %2693 = vmatprep.subr.bf16.mxu0 %v2692_v6 }
  0x26   : > { %2366 = vmatmul.mubr.msk.f32.gmra.mrb[6].mxu0 %vm375_vm0, %v341_v19  ;;  %2671 = vmatpush3.bf16.msra.mxu1 %v2668_v52 }
  0x27   : > { %2368 = vmatprep.mubr.msk.f32.mxu0 %vm375_vm0, %v342_v20  ;;  %2673 = vmatprep.subr.bf16.mxu1 %v2672_v55 }
  0x28   : > { %2695 = vmatpush3.bf16.msra.mxu0 %v2692_v6 }
  0x29   : > { %2697 = vmatprep.subr.bf16.mxu0 %v2696_v9 }
  0x2a   : > { %2369 = vmatmul.mubr.msk.f32.gmra.mrb[8].mxu0 %vm375_vm0, %v343_v21  ;;  %2675 = vmatpush3.bf16.msra.mxu1 %v2672_v55 }
  0x2b   : > { %2371 = vmatprep.mubr.msk.f32.mxu0 %vm375_vm0, %v344_v22  ;;  %2677 = vmatprep.subr.bf16.mxu1 %v2676_v58 }
  0x2c   : > { %2699 = vmatpush3.bf16.msra.mxu0 %v2696_v9 }
  0x2d   : > { %2701 = vmatprep.subr.bf16.mxu0 %v2700_v12 }
  0x2e   : > { %2372 = vmatmul.mubr.msk.f32.gmra.mrb[10].mxu0 %vm375_vm0, %v345_v23  ;;  %2679 = vmatpush3.bf16.msra.mxu1 %v2676_v58 }
  0x2f   : > { %2374 = vmatprep.mubr.msk.f32.mxu0 %vm375_vm0, %v346_v24 }
  0x30   : > { %2703 = vmatpush3.bf16.msra.mxu0 %v2700_v12 }
  0x32   : > { %2375 = vmatmul.mubr.msk.f32.gmra.mrb[12].mxu0 %vm375_vm0, %v347_v25 }
  0x33   : > { %2377 = vmatprep.mubr.msk.f32.mxu0 %vm375_vm0, %v348_v26 }
  0x36   : > { %2378 = vmatmul.mubr.msk.f32.gmra.mrb[14].mxu0 %vm375_vm0, %v349_v27 }
  0x37   : > { %2380 = vmatprep.mubr.msk.f32.mxu0 %vm375_vm0, %v350_v28 }
  0x3a   : > { %2381 = vmatmul.mubr.msk.f32.gmra.mrb[16].mxu0 %vm375_vm0, %v351_v29 }
  0x3b   : > { %2383 = vmatprep.mubr.msk.f32.mxu0 %vm375_vm0, %v352_v30 }
  0x3e   : > { %2384 = vmatmul.mubr.msk.f32.gmra.mrb[18].mxu0 %vm375_vm0, %v353_v31 }
  0x3f   : > { %2386 = vmatprep.mubr.msk.f32.mxu0 %vm375_vm0, %v354_v32 }
  0x42   : > { %2387 = vmatmul.mubr.msk.f32.gmra.mrb[20].mxu0 %vm375_vm0, %v355_v33 }
  0x43   : > { %2389 = vmatprep.mubr.msk.f32.mxu0 %vm375_vm0, %v356_v34 }
  0x46   : > { %2390 = vmatmul.mubr.msk.f32.gmra.mrb[22].mxu0 %vm375_vm0, %v357_v35 }
  0x47   : > { %2392 = vmatprep.mubr.msk.f32.mxu0 %vm375_vm0, %v358_v36 }
  0x4a   : > { %2393 = vmatmul.mubr.msk.f32.gmra.mrb[24].mxu0 %vm375_vm0, %v359_v37 }
  0x4b   : > { %2395 = vmatprep.mubr.msk.f32.mxu0 %vm375_vm0, %v360_v38 }
  0x4e   : > { %2396 = vmatmul.mubr.msk.f32.gmra.mrb[26].mxu0 %vm375_vm0, %v361_v39 }
  0x4f   : > { %2398 = vmatprep.mubr.msk.f32.mxu0 %vm375_vm0, %v362_v40 }
  0x52   : > { %2399 = vmatmul.mubr.msk.f32.gmra.mrb[28].mxu0 %vm375_vm0, %v363_v41 }
  0x53   : > { %2401 = vmatprep.mubr.msk.f32.mxu0 %vm375_vm0, %v364_v42 }
  0x56   : > { %2402 = vmatmul.mubr.msk.f32.gmra.mrb[30].mxu0 %vm375_vm0, %v365_v43 }
  0xed   : > { %v2358_v14 = vpop.f32.mrb[0].mxu0 }
  0xee   : > { %v544_v15 = vadd.f32 %v2358_v14, %v3321_v13  ;;  %v538_v16 = vpop.f32.mrb[1].mxu0 }
  0xef   : > { %v539_v17 = vadd.f32 %v3321_v13, %v538_v16 }
  0xf0   : > { %v730_v18 = vmul.f32 0.70710677, %v544_v15  ;;  %v698_v46 = vmul.f32 0.5, %v544_v15 }
  0xf1   : > { %v729_v19 = vmul.f32 0.70710677, %v539_v17  ;;  %v2361_v20 = vpop.f32.mrb[2].mxu0  ;;  %v697_v44 = vmul.f32 0.5, %v539_v17 }
  0xf2   : > { %2801 = verf.f32 %v730_v18  ;;  %v554_v21 = vadd.f32 %v2361_v20, %v3321_v13  ;;  %v548_v22 = vpop.f32.mrb[3].mxu0 }
  0xf3   : > { %2803 = verf.f32 %v729_v19  ;;  %v549_v23 = vadd.f32 %v3321_v13, %v548_v22 }
  0xf4   : > { %v732_v24 = vmul.f32 0.70710677, %v554_v21  ;;  %v700_v60 = vmul.f32 0.5, %v554_v21 }
  0xf5   : > { %v731_v25 = vmul.f32 0.70710677, %v549_v23  ;;  %v2364_v26 = vpop.f32.mrb[4].mxu0  ;;  %v699_v56 = vmul.f32 0.5, %v549_v23 }
  0xf6   : > { %2805 = verf.f32 %v732_v24  ;;  %v564_v27 = vadd.f32 %v2364_v26, %v3321_v13  ;;  %v558_v28 = vpop.f32.mrb[5].mxu0 }
  0xf7   : > { %2807 = verf.f32 %v731_v25  ;;  %v559_v29 = vadd.f32 %v3321_v13, %v558_v28 }
  0xf8   : > { %v734_v30 = vmul.f32 0.70710677, %v564_v27  ;;  %v702_v10 = vmul.f32 0.5, %v564_v27 }
  0xf9   : > { %v733_v31 = vmul.f32 0.70710677, %v559_v29  ;;  %v2367_v32 = vpop.f32.mrb[6].mxu0  ;;  %v701_v6 = vmul.f32 0.5, %v559_v29 }
  0xfa   : > { %2809 = verf.f32 %v734_v30  ;;  %v3330_v33 = vadd.f32 %v2367_v32, %v3321_v13  ;;  %v568_v34 = vpop.f32.mrb[7].mxu0 }
  0xfb   : > { %2811 = verf.f32 %v733_v31  ;;  %v569_v35 = vadd.f32 %v3321_v13, %v568_v34 }
  0xfc   : > { %v2802_v36 = vpop.eup %2801  ;;  %v736_v37 = vmul.f32 0.70710677, %v3330_v33  ;;  %v704_v25 = vmul.f32 0.5, %v3330_v33 }
  0xfd   : > { %v2804_v38 = vpop.eup %2803  ;;  %v794_v39 = vadd.f32 1.0, %v2802_v36  ;;  %v735_v40 = vmul.f32 0.70710677, %v569_v35  ;;  %v2370_v41 = vpop.f32.mrb[8].mxu0  ;;  %v703_v21 = vmul.f32 0.5, %v569_v35 }
  0xfe   : > { %2813 = verf.f32 %v736_v37  ;;  %v3335_v42 = vadd.f32 %v2370_v41, %v3321_v13  ;;  %v578_v43 = vpop.f32.mrb[9].mxu0  ;;  %v793_v45 = vadd.f32 1.0, %v2804_v38 }
  0xff   : > { %2815 = verf.f32 %v735_v40  ;;  %v3338_v47 = vadd.f32 %v3321_v13, %v578_v43  ;;  %v826_v55 = vmul.f32 %v794_v39, %v698_v46 }
 0x100   : > { %v2806_v48 = vpop.eup %2805  ;;  %v738_v49 = vmul.f32 0.70710677, %v3335_v42  ;;  %v825_v50 = vmul.f32 %v793_v45, %v697_v44  ;;  %v706_v39 = vmul.f32 0.5, %v3335_v42 }
 0x101   : > { %v2808_v51 = vpop.eup %2807  ;;  %v796_v52 = vadd.f32 1.0, %v2806_v48  ;;  %v737_v53 = vmul.f32 0.70710677, %v3338_v47  ;;  %v2373_v54 = vpop.f32.mrb[10].mxu0  ;;  %v705_v36 = vmul.f32 0.5, %v3338_v47 }
 0x102   : > { %v795_v57 = vadd.f32 1.0, %v2808_v51  ;;  %2817 = verf.f32 %v738_v49  ;;  %v3343_v58 = vadd.f32 %v2373_v54, %v3321_v13  ;;  %v588_v59 = vpop.f32.mrb[11].mxu0  ;;  %2436 = vmatprep.mubr.f32.mxu1 %v825_v50 }
 0x103   : > { %2819 = verf.f32 %v737_v53  ;;  %v3346_v61 = vadd.f32 %v3321_v13, %v588_v59  ;;  %2437 = vmatmul.mubr.f32.vlgmr.msra.gmra.mrb[0].mxu1 %v826_v55  ;;  %v828_v5 = vmul.f32 %v796_v52, %v700_v60 }
 0x104   : > { %v2810_v62 = vpop.eup %2809  ;;  %v740_v63 = vmul.f32 0.70710677, %v3343_v58  ;;  %v827_v0 = vmul.f32 %v795_v57, %v699_v56  ;;  %v708_v53 = vmul.f32 0.5, %v3343_v58 }
 0x105   : > { %v2812_v1 = vpop.eup %2811  ;;  %v798_v2 = vadd.f32 1.0, %v2810_v62  ;;  %v739_v3 = vmul.f32 0.70710677, %v3346_v61  ;;  %v2376_v4 = vpop.f32.mrb[12].mxu0  ;;  %v707_v50 = vmul.f32 0.5, %v3346_v61 }
 0x106   : > { %v797_v7 = vadd.f32 1.0, %v2812_v1  ;;  %2821 = verf.f32 %v740_v63  ;;  %v3351_v8 = vadd.f32 %v2376_v4, %v3321_v13  ;;  %v598_v9 = vpop.f32.mrb[13].mxu0  ;;  %2439 = vmatprep.mubr.f32.mxu1 %v827_v0 }
 0x107   : > { %2823 = verf.f32 %v739_v3  ;;  %v3354_v11 = vadd.f32 %v3321_v13, %v598_v9  ;;  %2440 = vmatmul.mubr.f32.gmra.mrb[2].mxu1 %v828_v5  ;;  %v830_v20 = vmul.f32 %v798_v2, %v702_v10 }
 0x108   : > { %v2814_v12 = vpop.eup %2813  ;;  %v742_v14 = vmul.f32 0.70710677, %v3351_v8  ;;  %v829_v15 = vmul.f32 %v797_v7, %v701_v6  ;;  %v710_v3 = vmul.f32 0.5, %v3351_v8 }
 0x109   : > { %v2816_v16 = vpop.eup %2815  ;;  %v800_v17 = vadd.f32 1.0, %v2814_v12  ;;  %v741_v18 = vmul.f32 0.70710677, %v3354_v11  ;;  %v2379_v19 = vpop.f32.mrb[14].mxu0  ;;  %v709_v0 = vmul.f32 0.5, %v3354_v11 }
 0x10a   : > { %v799_v22 = vadd.f32 1.0, %v2816_v16  ;;  %2825 = verf.f32 %v742_v14  ;;  %v3359_v23 = vadd.f32 %v2379_v19, %v3321_v13  ;;  %v608_v24 = vpop.f32.mrb[15].mxu0  ;;  %2442 = vmatprep.mubr.f32.mxu1 %v829_v15 }
 0x10b   : > { %2827 = verf.f32 %v741_v18  ;;  %v3363_v26 = vadd.f32 %v3321_v13, %v608_v24  ;;  %2443 = vmatmul.mubr.f32.gmra.mrb[4].mxu1 %v830_v20  ;;  %v832_v35 = vmul.f32 %v800_v17, %v704_v25 }
 0x10c   : > { %v2818_v27 = vpop.eup %2817  ;;  %v744_v28 = vmul.f32 0.70710677, %v3359_v23  ;;  %v831_v29 = vmul.f32 %v799_v22, %v703_v21  ;;  %v712_v18 = vmul.f32 0.5, %v3359_v23 }
 0x10d   : > { %v2820_v30 = vpop.eup %2819  ;;  %v802_v31 = vadd.f32 1.0, %v2818_v27  ;;  %v743_v32 = vmul.f32 0.70710677, %v3363_v26  ;;  %v2382_v34 = vpop.f32.mrb[16].mxu0  ;;  %v711_v15 = vmul.f32 0.5, %v3363_v26 }
 0x10e   : > { %v801_v37 = vadd.f32 1.0, %v2820_v30  ;;  %2829 = verf.f32 %v744_v28  ;;  %v3369_v33 = vadd.f32 %v2382_v34, %v3321_v13  ;;  %v618_v38 = vpop.f32.mrb[17].mxu0  ;;  %2445 = vmatprep.mubr.f32.mxu1 %v831_v29 }
 0x10f   : > { %2831 = verf.f32 %v743_v32  ;;  %v3373_v40 = vadd.f32 %v3321_v13, %v618_v38  ;;  %2446 = vmatmul.mubr.f32.gmra.mrb[6].mxu1 %v832_v35  ;;  %v834_v49 = vmul.f32 %v802_v31, %v706_v39 }
 0x110   : > { %v2822_v41 = vpop.eup %2821  ;;  %v746_v43 = vmul.f32 0.70710677, %v3369_v33  ;;  %v833_v44 = vmul.f32 %v801_v37, %v705_v36  ;;  %v714_v32 = vmul.f32 0.5, %v3369_v33 }
 0x111   : > { %v2824_v45 = vpop.eup %2823  ;;  %v804_v46 = vadd.f32 1.0, %v2822_v41  ;;  %v745_v47 = vmul.f32 0.70710677, %v3373_v40  ;;  %v2385_v48 = vpop.f32.mrb[18].mxu0  ;;  %v713_v29 = vmul.f32 0.5, %v3373_v40 }
 0x112   : > { %v803_v51 = vadd.f32 1.0, %v2824_v45  ;;  %2833 = verf.f32 %v746_v43  ;;  %v3379_v42 = vadd.f32 %v2385_v48, %v3321_v13  ;;  %v628_v52 = vpop.f32.mrb[19].mxu0  ;;  %2448 = vmatprep.mubr.f32.mxu1 %v833_v44 }
 0x113   : > { %2835 = verf.f32 %v745_v47  ;;  %v3383_v54 = vadd.f32 %v3321_v13, %v628_v52  ;;  %2449 = vmatmul.mubr.f32.gmra.mrb[8].mxu1 %v834_v49  ;;  %v836_v63 = vmul.f32 %v804_v46, %v708_v53 }
 0x114   : > { %v2826_v55 = vpop.eup %2825  ;;  %v748_v56 = vmul.f32 0.70710677, %v3379_v42  ;;  %v835_v57 = vmul.f32 %v803_v51, %v707_v50  ;;  %v716_v47 = vmul.f32 0.5, %v3379_v42 }
 0x115   : > { %v2828_v59 = vpop.eup %2827  ;;  %v806_v60 = vadd.f32 1.0, %v2826_v55  ;;  %v747_v61 = vmul.f32 0.70710677, %v3383_v54  ;;  %v2388_v62 = vpop.f32.mrb[20].mxu0  ;;  %v715_v44 = vmul.f32 0.5, %v3383_v54 }
 0x116   : > { %v805_v1 = vadd.f32 1.0, %v2828_v59  ;;  %2837 = verf.f32 %v748_v56  ;;  %v3389_v58 = vadd.f32 %v2388_v62, %v3321_v13  ;;  %v638_v2 = vpop.f32.mrb[21].mxu0  ;;  %2451 = vmatprep.mubr.f32.mxu1 %v835_v57 }
 0x117   : > { %2839 = verf.f32 %v747_v61  ;;  %v3393_v4 = vadd.f32 %v3321_v13, %v638_v2  ;;  %2452 = vmatmul.mubr.f32.gmra.mrb[10].mxu1 %v836_v63  ;;  %v838_v14 = vmul.f32 %v806_v60, %v710_v3 }
 0x118   : > { %v2830_v5 = vpop.eup %2829  ;;  %v750_v6 = vmul.f32 0.70710677, %v3389_v58  ;;  %v837_v7 = vmul.f32 %v805_v1, %v709_v0  ;;  %v718_v61 = vmul.f32 0.5, %v3389_v58 }
 0x119   : > { %v2832_v9 = vpop.eup %2831  ;;  %v808_v10 = vadd.f32 1.0, %v2830_v5  ;;  %v749_v11 = vmul.f32 0.70710677, %v3393_v4  ;;  %v2391_v12 = vpop.f32.mrb[22].mxu0  ;;  %v717_v57 = vmul.f32 0.5, %v3393_v4 }
 0x11a   : > { %v807_v16 = vadd.f32 1.0, %v2832_v9  ;;  %2841 = verf.f32 %v750_v6  ;;  %v3399_v8 = vadd.f32 %v2391_v12, %v3321_v13  ;;  %v648_v17 = vpop.f32.mrb[23].mxu0  ;;  %2454 = vmatprep.mubr.f32.mxu1 %v837_v7 }
 0x11b   : > { %2843 = verf.f32 %v749_v11  ;;  %v3403_v19 = vadd.f32 %v3321_v13, %v648_v17  ;;  %2455 = vmatmul.mubr.f32.gmra.mrb[12].mxu1 %v838_v14  ;;  %v840_v28 = vmul.f32 %v808_v10, %v712_v18 }
 0x11c   : > { %v2834_v20 = vpop.eup %2833  ;;  %v752_v21 = vmul.f32 0.70710677, %v3399_v8  ;;  %v839_v22 = vmul.f32 %v807_v16, %v711_v15  ;;  %v720_v58 = vmul.f32 0.5, %v3399_v8 }
 0x11d   : > { %v2836_v24 = vpop.eup %2835  ;;  %v810_v25 = vadd.f32 1.0, %v2834_v20  ;;  %v751_v26 = vmul.f32 0.70710677, %v3403_v19  ;;  %v2394_v27 = vpop.f32.mrb[24].mxu0  ;;  %v719_v7 = vmul.f32 0.5, %v3403_v19 }
 0x11e   : > { %v809_v30 = vadd.f32 1.0, %v2836_v24  ;;  %2845 = verf.f32 %v752_v21  ;;  %v3409_v23 = vadd.f32 %v2394_v27, %v3321_v13  ;;  %v658_v31 = vpop.f32.mrb[25].mxu0  ;;  %2457 = vmatprep.mubr.f32.mxu1 %v839_v22 }
 0x11f   : > { %2847 = verf.f32 %v751_v26  ;;  %v3413_v34 = vadd.f32 %v3321_v13, %v658_v31  ;;  %2458 = vmatmul.mubr.f32.gmra.mrb[14].mxu1 %v840_v28  ;;  %v842_v43 = vmul.f32 %v810_v25, %v714_v32 }
 0x120   : > { %v2838_v35 = vpop.eup %2837  ;;  %v754_v36 = vmul.f32 0.70710677, %v3409_v23  ;;  %v841_v37 = vmul.f32 %v809_v30, %v713_v29  ;;  %v722_v24 = vmul.f32 0.5, %v3409_v23 }
 0x121   : > { %v2840_v38 = vpop.eup %2839  ;;  %v812_v39 = vadd.f32 1.0, %v2838_v35  ;;  %v753_v40 = vmul.f32 0.70710677, %v3413_v34  ;;  %v2397_v41 = vpop.f32.mrb[26].mxu0  ;;  %v721_v19 = vmul.f32 0.5, %v3413_v34 }
 0x122   : > { %v811_v45 = vadd.f32 1.0, %v2840_v38  ;;  %2849 = verf.f32 %v754_v36  ;;  %v3419_v33 = vadd.f32 %v2397_v41, %v3321_v13  ;;  %v668_v46 = vpop.f32.mrb[27].mxu0  ;;  %2460 = vmatprep.mubr.f32.mxu1 %v841_v37 }
 0x123   : > { %2851 = verf.f32 %v753_v40  ;;  %v669_v48 = vadd.f32 %v3321_v13, %v668_v46  ;;  %2461 = vmatmul.mubr.f32.gmra.mrb[16].mxu1 %v842_v43  ;;  %v844_v56 = vmul.f32 %v812_v39, %v716_v47 }
 0x124   : > { %v2842_v49 = vpop.eup %2841  ;;  %v756_v50 = vmul.f32 0.70710677, %v3419_v33  ;;  %v843_v51 = vmul.f32 %v811_v45, %v715_v44  ;;  %v724_v30 = vmul.f32 0.5, %v3419_v33 }
 0x125   : > { %v2844_v52 = vpop.eup %2843  ;;  %v814_v53 = vadd.f32 1.0, %v2842_v49  ;;  %v755_v54 = vmul.f32 0.70710677, %v669_v48  ;;  %v2400_v55 = vpop.f32.mrb[28].mxu0  ;;  %v723_v28 = vmul.f32 0.5, %v669_v48  ;;  %v1277_v49 = vld [vmem:[%s3880_s5 + $0x60] sm:$0xff] }
 0x126   : > { %v813_v59 = vadd.f32 1.0, %v2844_v52  ;;  %2853 = verf.f32 %v756_v50  ;;  %v684_v60 = vadd.f32 %v2400_v55, %v3321_v13  ;;  %v678_v42 = vpop.f32.mrb[29].mxu0  ;;  %2463 = vmatprep.mubr.f32.mxu1 %v843_v51  ;;  %v1278_v50 = vld [vmem:[%s3880_s5 + $0x68] sm:$0xff]  ;;  %v1279_v52 = vld [vmem:[%s3880_s5 + $0x70] sm:$0xff]  ;;  %v1673_v55 = vld [vmem:[%s3882_s7] sm:$0xff] }
 0x127   : > { %2855 = verf.f32 %v755_v54  ;;  %v679_v62 = vadd.f32 %v3321_v13, %v678_v42  ;;  %2464 = vmatmul.mubr.f32.gmra.mrb[18].mxu1 %v844_v56  ;;  %v846_v4 = vmul.f32 %v814_v53, %v718_v61  ;;  %v2704_v51 = vpack.c.bf16 %v1278_v50, %v1277_v49  ;;  %v1280_v53 = vld [vmem:[%s3880_s5 + $0x78] sm:$0xff]  ;;  %v1674_v56 = vld [vmem:[%s3882_s7 + $0x8] sm:$0xff]  ;;  %v1677_v61 = vld [vmem:[%s3882_s7 + $0x20] sm:$0xff] }
 0x128   : > { %v2846_v63 = vpop.eup %2845  ;;  %v758_v0 = vmul.f32 0.70710677, %v684_v60  ;;  %v845_v1 = vmul.f32 %v813_v59, %v717_v57  ;;  %v726_v38 = vmul.f32 0.5, %v684_v60  ;;  %v2708_v54 = vpack.c.bf16 %v1280_v53, %v1279_v52  ;;  %v1675_v57 = vld [vmem:[%s3882_s7 + $0x10] sm:$0xff]  ;;  %v1676_v60 = vld [vmem:[%s3882_s7 + $0x18] sm:$0xff] }
 0x129   : > { %v2848_v2 = vpop.eup %2847  ;;  %v816_v3 = vadd.f32 1.0, %v2846_v63  ;;  %v757_v5 = vmul.f32 0.70710677, %v679_v62  ;;  %v2403_v6 = vpop.f32.mrb[30].mxu0  ;;  %v725_v37 = vmul.f32 0.5, %v679_v62  ;;  %2705 = vmatprep.subr.bf16.mxu0 %v2704_v51  ;;  %v3456_v59 = vpack.c.bf16 %v1674_v56, %v1673_v55  ;;  %v1678_v62 = vld [vmem:[%s3882_s7 + $0x28] sm:$0xff] }
 0x12a   : > { %v815_v9 = vadd.f32 1.0, %v2848_v2  ;;  %2857 = verf.f32 %v758_v0  ;;  %v694_v10 = vadd.f32 %v2403_v6, %v3321_v13  ;;  %v688_v11 = vpop.f32.mrb[31].mxu0  ;;  %2466 = vmatprep.mubr.f32.mxu1 %v845_v1  ;;  %2707 = vmatpush3.bf16.msra.mxu0 %v2704_v51  ;;  %v3462_v42 = vpack.c.bf16 %v1676_v60, %v1675_v57  ;;  %v1679_v0 = vld [vmem:[%s3882_s7 + $0x30] sm:$0xff]  ;;  %v1680_v1 = vld [vmem:[%s3882_s7 + $0x38] sm:$0xff] }
 0x12b   : > { %2859 = verf.f32 %v757_v5  ;;  %v689_v12 = vadd.f32 %v3321_v13, %v688_v11  ;;  %2467 = vmatmul.mubr.f32.gmra.mrb[20].mxu1 %v846_v4  ;;  %v848_v21 = vmul.f32 %v816_v3, %v720_v58  ;;  %2709 = vmatprep.subr.bf16.mxu0 %v2708_v54  ;;  %v3473_v63 = vpack.c.bf16 %v1678_v62, %v1677_v61  ;;  %v3491_v3 = vld [vmem:[%s3879_s4] ss:$0 sm:$0xff] }
 0x12c   : > { %v2850_v14 = vpop.eup %2849  ;;  %v760_v15 = vmul.f32 0.70710677, %v694_v10  ;;  %v847_v16 = vmul.f32 %v815_v9, %v719_v7  ;;  %v728_v33 = vmul.f32 0.5, %v694_v10  ;;  %2744 = vmatprep.subr.bf16.mxu1 %v3456_v59  ;;  %v3483_v2 = vpack.c.bf16 %v1680_v1, %v1679_v0 }
 0x12d   : > { %v2852_v17 = vpop.eup %2851  ;;  %v818_v18 = vadd.f32 1.0, %v2850_v14  ;;  %v759_v20 = vmul.f32 0.70710677, %v689_v12  ;;  %v727_v45 = vmul.f32 0.5, %v689_v12  ;;  %2752 = vmatpush3.bf16.msra.mxu1 %v3456_v59 }
 0x12e   : > { %v817_v22 = vadd.f32 1.0, %v2852_v17  ;;  %2861 = verf.f32 %v760_v15  ;;  %2469 = vmatprep.mubr.f32.mxu1 %v847_v16  ;;  %2711 = vmatpush3.bf16.msra.mxu0 %v2708_v54 }
 0x12f   : > { %2863 = verf.f32 %v759_v20  ;;  %2470 = vmatmul.mubr.f32.gmra.mrb[22].mxu1 %v848_v21  ;;  %v850_v27 = vmul.f32 %v818_v18, %v722_v24  ;;  %2713 = vmatprep.subr.bf16.mxu0 %v3456_v59 }
 0x130   : > { %v2854_v8 = vpop.eup %2853  ;;  %v849_v25 = vmul.f32 %v817_v22, %v721_v19  ;;  %2745 = vmatprep.subr.bf16.mxu1 %v3462_v42 }
 0x131   : > { %v2856_v13 = vpop.eup %2855  ;;  %v820_v26 = vadd.f32 1.0, %v2854_v8  ;;  %2753 = vmatpush3.bf16.msra.mxu1 %v3462_v42 }
 0x132   : > { %v819_v29 = vadd.f32 1.0, %v2856_v13  ;;  %2472 = vmatprep.mubr.f32.mxu1 %v849_v25  ;;  %2746 = vmatprep.subr.bf16.mxu1 %v3473_v63 }
 0x133   : > { %2473 = vmatmul.mubr.f32.gmra.mrb[24].mxu1 %v850_v27  ;;  %v852_v36 = vmul.f32 %v820_v26, %v724_v30 }
 0x134   : > { %v2858_v31 = vpop.eup %2857  ;;  %v851_v32 = vmul.f32 %v819_v29, %v723_v28 }
 0x135   : > { %v2860_v34 = vpop.eup %2859  ;;  %v822_v35 = vadd.f32 1.0, %v2858_v31  ;;  %2754 = vmatpush3.bf16.msra.mxu1 %v3473_v63 }
 0x136   : > { %v821_v23 = vadd.f32 1.0, %v2860_v34  ;;  %2475 = vmatprep.mubr.f32.mxu1 %v851_v32  ;;  %2747 = vmatprep.subr.bf16.mxu1 %v3483_v2 }
 0x137   : > { %2476 = vmatmul.mubr.f32.gmra.mrb[26].mxu1 %v852_v36  ;;  %v854_v44 = vmul.f32 %v822_v35, %v726_v38 }
 0x138   : > { %v2862_v39 = vpop.eup %2861  ;;  %v853_v40 = vmul.f32 %v821_v23, %v725_v37 }
 0x139   : > { %v2864_v41 = vpop.eup %2863  ;;  %v824_v43 = vadd.f32 1.0, %v2862_v39  ;;  %2755 = vmatpush3.bf16.msra.mxu1 %v3483_v2 }
 0x13a   : > { %v823_v46 = vadd.f32 1.0, %v2864_v41  ;;  %2478 = vmatprep.mubr.f32.mxu1 %v853_v40 }
 0x13b   : > { %2479 = vmatmul.mubr.f32.gmra.mrb[28].mxu1 %v854_v44  ;;  %v856_v48 = vmul.f32 %v824_v43, %v728_v33 }
 0x13c   : > { %v855_v47 = vmul.f32 %v823_v46, %v727_v45 }
 0x13e   : > { %2481 = vmatprep.mubr.f32.mxu1 %v855_v47 }
 0x13f   : > { %2482 = vmatmul.mubr.f32.gmra.mrb[30].mxu1 %v856_v48 }
 0x1d6   : > { %v2438_v5 = vpop.f32.mrb[0].mxu1 }
 0x1d7   : > { %v952_v6 = vadd.f32 %v2438_v5, %v3491_v3  ;;  %v946_v4 = vpop.f32.mrb[1].mxu1 }
 0x1d8   : > { %v947_v7 = vadd.f32 %v3491_v3, %v946_v4 }
 0x1d9   : > { %v1138_v9 = vmul.f32 0.70710677, %v952_v6  ;;  %v1106_v37 = vmul.f32 0.5, %v952_v6 }
 0x1da   : > { %v1137_v10 = vmul.f32 0.70710677, %v947_v7  ;;  %v2441_v11 = vpop.f32.mrb[2].mxu1  ;;  %v1105_v32 = vmul.f32 0.5, %v947_v7 }
 0x1db   : > { %2865 = verf.f32 %v1138_v9  ;;  %v962_v58 = vadd.f32 %v2441_v11, %v3491_v3  ;;  %v956_v12 = vpop.f32.mrb[3].mxu1 }
 0x1dc   : > { %2867 = verf.f32 %v1137_v10  ;;  %v957_v14 = vadd.f32 %v3491_v3, %v956_v12 }
 0x1dd   : > { %v1140_v15 = vmul.f32 0.70710677, %v962_v58  ;;  %v1108_v50 = vmul.f32 0.5, %v962_v58 }
 0x1de   : > { %v1139_v16 = vmul.f32 0.70710677, %v957_v14  ;;  %v2444_v17 = vpop.f32.mrb[4].mxu1  ;;  %v1107_v33 = vmul.f32 0.5, %v957_v14 }
 0x1df   : > { %2869 = verf.f32 %v1140_v15  ;;  %v972_v18 = vadd.f32 %v2444_v17, %v3491_v3  ;;  %v966_v20 = vpop.f32.mrb[5].mxu1 }
 0x1e0   : > { %2871 = verf.f32 %v1139_v16  ;;  %v967_v21 = vadd.f32 %v3491_v3, %v966_v20 }
 0x1e1   : > { %v1142_v19 = vmul.f32 0.70710677, %v972_v18  ;;  %v1110_v6 = vmul.f32 0.5, %v972_v18 }
 0x1e2   : > { %v1141_v22 = vmul.f32 0.70710677, %v967_v21  ;;  %v2447_v24 = vpop.f32.mrb[6].mxu1  ;;  %v1109_v62 = vmul.f32 0.5, %v967_v21 }
 0x1e3   : > { %2873 = verf.f32 %v1142_v19  ;;  %v3500_v8 = vadd.f32 %v2447_v24, %v3491_v3  ;;  %v976_v25 = vpop.f32.mrb[7].mxu1 }
 0x1e4   : > { %2875 = verf.f32 %v1141_v22  ;;  %v977_v13 = vadd.f32 %v3491_v3, %v976_v25 }
 0x1e5   : > { %v2866_v26 = vpop.eup %2865  ;;  %v1144_v27 = vmul.f32 0.70710677, %v3500_v8  ;;  %v1112_v20 = vmul.f32 0.5, %v3500_v8 }
 0x1e6   : > { %v2868_v28 = vpop.eup %2867  ;;  %v1202_v29 = vadd.f32 1.0, %v2866_v26  ;;  %v1143_v30 = vmul.f32 0.70710677, %v977_v13  ;;  %v2450_v31 = vpop.f32.mrb[8].mxu1  ;;  %v1111_v15 = vmul.f32 0.5, %v977_v13 }
 0x1e7   : > { %v1201_v34 = vadd.f32 1.0, %v2868_v28  ;;  %2877 = verf.f32 %v1144_v27  ;;  %v3505_v35 = vadd.f32 %v2450_v31, %v3491_v3  ;;  %v986_v36 = vpop.f32.mrb[9].mxu1 }
 0x1e8   : > { %2879 = verf.f32 %v1143_v30  ;;  %v3508_v23 = vadd.f32 %v3491_v3, %v986_v36  ;;  %v1234_v43 = vmul.f32 %v1202_v29, %v1106_v37 }
 0x1e9   : > { %v2870_v38 = vpop.eup %2869  ;;  %v1146_v39 = vmul.f32 0.70710677, %v3505_v35  ;;  %v1233_v40 = vmul.f32 %v1201_v34, %v1105_v32  ;;  %v1114_v31 = vmul.f32 0.5, %v3505_v35 }
 0x1ea   : > { %v2872_v41 = vpop.eup %2871  ;;  %v1204_v44 = vadd.f32 1.0, %v2870_v38  ;;  %v1145_v45 = vmul.f32 0.70710677, %v3508_v23  ;;  %v2453_v46 = vpop.f32.mrb[10].mxu1  ;;  %v1113_v8 = vmul.f32 0.5, %v3508_v23 }
 0x1eb   : > { %v1203_v47 = vadd.f32 1.0, %v2872_v41  ;;  %2881 = verf.f32 %v1146_v39  ;;  %v3513_v48 = vadd.f32 %v2453_v46, %v3491_v3  ;;  %v996_v49 = vpop.f32.mrb[11].mxu1  ;;  %2516 = vmatprep.mubr.f32.mxu0 %v1233_v40 }
 0x1ec   : > { %2883 = verf.f32 %v1145_v45  ;;  %v3516_v51 = vadd.f32 %v3491_v3, %v996_v49  ;;  %2517 = vmatmul.mubr.f32.vlgmr.msra.gmra.mrb[32].mxu0 %v1234_v43  ;;  %v1236_v61 = vmul.f32 %v1204_v44, %v1108_v50 }
 0x1ed   : > { %v2874_v52 = vpop.eup %2873  ;;  %v1148_v53 = vmul.f32 0.70710677, %v3513_v48  ;;  %v1235_v54 = vmul.f32 %v1203_v47, %v1107_v33  ;;  %2715 = vmatpush3.bf16.msra.mxu0 %v3456_v59  ;;  %v1116_v45 = vmul.f32 0.5, %v3513_v48 }
 0x1ee   : > { %v2876_v55 = vpop.eup %2875  ;;  %v1206_v56 = vadd.f32 1.0, %v2874_v52  ;;  %v1147_v57 = vmul.f32 0.70710677, %v3516_v51  ;;  %v2456_v60 = vpop.f32.mrb[12].mxu1  ;;  %2717 = vmatprep.subr.bf16.mxu0 %v3462_v42  ;;  %v1115_v41 = vmul.f32 0.5, %v3516_v51 }
 0x1ef   : > { %v1205_v0 = vadd.f32 1.0, %v2876_v55  ;;  %2885 = verf.f32 %v1148_v53  ;;  %v3523_v1 = vadd.f32 %v2456_v60, %v3491_v3  ;;  %v1006_v5 = vpop.f32.mrb[13].mxu1  ;;  %2519 = vmatprep.mubr.f32.mxu0 %v1235_v54 }
 0x1f0   : > { %2887 = verf.f32 %v1147_v57  ;;  %v3526_v59 = vadd.f32 %v3491_v3, %v1006_v5  ;;  %2520 = vmatmul.mubr.f32.gmra.mrb[34].mxu0 %v1236_v61  ;;  %v1238_v14 = vmul.f32 %v1206_v56, %v1110_v6 }
 0x1f1   : > { %v2878_v4 = vpop.eup %2877  ;;  %v1150_v7 = vmul.f32 0.70710677, %v3523_v1  ;;  %v1237_v9 = vmul.f32 %v1205_v0, %v1109_v62  ;;  %2719 = vmatpush3.bf16.msra.mxu0 %v3462_v42  ;;  %v1118_v57 = vmul.f32 0.5, %v3523_v1 }
 0x1f2   : > { %v2880_v10 = vpop.eup %2879  ;;  %v1208_v11 = vadd.f32 1.0, %v2878_v4  ;;  %v1149_v58 = vmul.f32 0.70710677, %v3526_v59  ;;  %v2459_v12 = vpop.f32.mrb[14].mxu1  ;;  %2721 = vmatprep.subr.bf16.mxu0 %v3473_v63  ;;  %v1117_v54 = vmul.f32 0.5, %v3526_v59 }
 0x1f3   : > { %v1207_v16 = vadd.f32 1.0, %v2880_v10  ;;  %2889 = verf.f32 %v1150_v7  ;;  %v3533_v17 = vadd.f32 %v2459_v12, %v3491_v3  ;;  %v1016_v18 = vpop.f32.mrb[15].mxu1  ;;  %2522 = vmatprep.mubr.f32.mxu0 %v1237_v9 }
 0x1f4   : > { %2891 = verf.f32 %v1149_v58  ;;  %v3537_v42 = vadd.f32 %v3491_v3, %v1016_v18  ;;  %2523 = vmatmul.mubr.f32.gmra.mrb[36].mxu0 %v1238_v14  ;;  %v1240_v27 = vmul.f32 %v1208_v11, %v1112_v20 }
 0x1f5   : > { %v2882_v21 = vpop.eup %2881  ;;  %v1152_v19 = vmul.f32 0.70710677, %v3533_v17  ;;  %v1239_v22 = vmul.f32 %v1207_v16, %v1111_v15  ;;  %2723 = vmatpush3.bf16.msra.mxu0 %v3473_v63  ;;  %v1120_v58 = vmul.f32 0.5, %v3533_v17 }
 0x1f6   : > { %v2884_v24 = vpop.eup %2883  ;;  %v1210_v25 = vadd.f32 1.0, %v2882_v21  ;;  %v1151_v13 = vmul.f32 0.70710677, %v3537_v42  ;;  %v2462_v26 = vpop.f32.mrb[16].mxu1  ;;  %2725 = vmatprep.subr.bf16.mxu0 %v3483_v2  ;;  %v1119_v9 = vmul.f32 0.5, %v3537_v42 }
 0x1f7   : > { %v1209_v28 = vadd.f32 1.0, %v2884_v24  ;;  %2893 = verf.f32 %v1152_v19  ;;  %v3545_v29 = vadd.f32 %v2462_v26, %v3491_v3  ;;  %v1026_v30 = vpop.f32.mrb[17].mxu1  ;;  %2525 = vmatprep.mubr.f32.mxu0 %v1239_v22 }
 0x1f8   : > { %2895 = verf.f32 %v1151_v13  ;;  %v3549_v63 = vadd.f32 %v3491_v3, %v1026_v30  ;;  %2526 = vmatmul.mubr.f32.gmra.mrb[38].mxu0 %v1240_v27  ;;  %v1242_v40 = vmul.f32 %v1210_v25, %v1114_v31 }
 0x1f9   : > { %v2886_v32 = vpop.eup %2885  ;;  %v1154_v34 = vmul.f32 0.70710677, %v3545_v29  ;;  %v1241_v36 = vmul.f32 %v1209_v28, %v1113_v8  ;;  %2727 = vmatpush3.bf16.msra.mxu0 %v3483_v2  ;;  %v1122_v13 = vmul.f32 0.5, %v3545_v29 }
 0x1fa   : > { %v2888_v37 = vpop.eup %2887  ;;  %v1212_v23 = vadd.f32 1.0, %v2886_v32  ;;  %v1153_v38 = vmul.f32 0.70710677, %v3549_v63  ;;  %v2465_v39 = vpop.f32.mrb[18].mxu1  ;;  %v1121_v22 = vmul.f32 0.5, %v3549_v63 }
 0x1fb   : > { %v1211_v35 = vadd.f32 1.0, %v2888_v37  ;;  %2897 = verf.f32 %v1154_v34  ;;  %v3556_v43 = vadd.f32 %v2465_v39, %v3491_v3  ;;  %v1036_v44 = vpop.f32.mrb[19].mxu1  ;;  %2528 = vmatprep.mubr.f32.mxu0 %v1241_v36 }
 0x1fc   : > { %2899 = verf.f32 %v1153_v38  ;;  %v3560_v2 = vadd.f32 %v3491_v3, %v1036_v44  ;;  %2529 = vmatmul.mubr.f32.gmra.mrb[40].mxu0 %v1242_v40  ;;  %v1244_v53 = vmul.f32 %v1212_v23, %v1116_v45 }
 0x1fd   : > { %v2890_v46 = vpop.eup %2889  ;;  %v1156_v33 = vmul.f32 0.70710677, %v3556_v43  ;;  %v1243_v47 = vmul.f32 %v1211_v35, %v1115_v41  ;;  %v1124_v38 = vmul.f32 0.5, %v3556_v43 }
 0x1fe   : > { %v2892_v49 = vpop.eup %2891  ;;  %v1214_v50 = vadd.f32 1.0, %v2890_v46  ;;  %v1155_v51 = vmul.f32 0.70710677, %v3560_v2  ;;  %v2468_v52 = vpop.f32.mrb[20].mxu1  ;;  %v1123_v36 = vmul.f32 0.5, %v3560_v2 }
 0x1ff   : > { %v1213_v55 = vadd.f32 1.0, %v2892_v49  ;;  %2901 = verf.f32 %v1156_v33  ;;  %v3566_v48 = vadd.f32 %v2468_v52, %v3491_v3  ;;  %v1046_v56 = vpop.f32.mrb[21].mxu1  ;;  %2531 = vmatprep.mubr.f32.mxu0 %v1243_v47 }
 0x200   : > { %2903 = verf.f32 %v1155_v51  ;;  %v3570_v60 = vadd.f32 %v3491_v3, %v1046_v56  ;;  %2532 = vmatmul.mubr.f32.gmra.mrb[42].mxu0 %v1244_v53  ;;  %v1246_v7 = vmul.f32 %v1214_v50, %v1118_v57 }
 0x201   : > { %v2894_v61 = vpop.eup %2893  ;;  %v1158_v62 = vmul.f32 0.70710677, %v3566_v48  ;;  %v1245_v0 = vmul.f32 %v1213_v55, %v1117_v54  ;;  %v1126_v51 = vmul.f32 0.5, %v3566_v48 }
 0x202   : > { %v2896_v5 = vpop.eup %2895  ;;  %v1216_v6 = vadd.f32 1.0, %v2894_v61  ;;  %v1157_v59 = vmul.f32 0.70710677, %v3570_v60  ;;  %v2471_v4 = vpop.f32.mrb[22].mxu1  ;;  %v1125_v47 = vmul.f32 0.5, %v3570_v60 }
 0x203   : > { %v1215_v10 = vadd.f32 1.0, %v2896_v5  ;;  %2905 = verf.f32 %v1158_v62  ;;  %v3576_v1 = vadd.f32 %v2471_v4, %v3491_v3  ;;  %v1056_v11 = vpop.f32.mrb[23].mxu1  ;;  %2534 = vmatprep.mubr.f32.mxu0 %v1245_v0 }
 0x204   : > { %2907 = verf.f32 %v1157_v59  ;;  %v3580_v12 = vadd.f32 %v3491_v3, %v1056_v11  ;;  %2535 = vmatmul.mubr.f32.gmra.mrb[44].mxu0 %v1246_v7  ;;  %v1248_v19 = vmul.f32 %v1216_v6, %v1120_v58 }
 0x205   : > { %v2898_v14 = vpop.eup %2897  ;;  %v1160_v15 = vmul.f32 0.70710677, %v3576_v1  ;;  %v1247_v16 = vmul.f32 %v1215_v10, %v1119_v9  ;;  %v1128_v48 = vmul.f32 0.5, %v3576_v1 }
 0x206   : > { %v2900_v18 = vpop.eup %2899  ;;  %v1218_v20 = vadd.f32 1.0, %v2898_v14  ;;  %v1159_v42 = vmul.f32 0.70710677, %v3580_v12  ;;  %v2474_v21 = vpop.f32.mrb[24].mxu1  ;;  %v1127_v0 = vmul.f32 0.5, %v3580_v12 }
 0x207   : > { %v1217_v24 = vadd.f32 1.0, %v2900_v18  ;;  %2909 = verf.f32 %v1160_v15  ;;  %v3586_v17 = vadd.f32 %v2474_v21, %v3491_v3  ;;  %v1066_v25 = vpop.f32.mrb[25].mxu1  ;;  %2537 = vmatprep.mubr.f32.mxu0 %v1247_v16 }
 0x208   : > { %2911 = verf.f32 %v1159_v42  ;;  %v3590_v26 = vadd.f32 %v3491_v3, %v1066_v25  ;;  %2538 = vmatmul.mubr.f32.gmra.mrb[46].mxu0 %v1248_v19  ;;  %v1250_v34 = vmul.f32 %v1218_v20, %v1122_v13 }
 0x209   : > { %v2902_v27 = vpop.eup %2901  ;;  %v1162_v8 = vmul.f32 0.70710677, %v3586_v17  ;;  %v1249_v28 = vmul.f32 %v1217_v24, %v1121_v22  ;;  %v1130_v18 = vmul.f32 0.5, %v3586_v17 }
 0x20a   : > { %v2904_v30 = vpop.eup %2903  ;;  %v1220_v31 = vadd.f32 1.0, %v2902_v27  ;;  %v1161_v63 = vmul.f32 0.70710677, %v3590_v26  ;;  %v2477_v32 = vpop.f32.mrb[26].mxu1  ;;  %v1129_v12 = vmul.f32 0.5, %v3590_v26 }
 0x20b   : > { %v1219_v37 = vadd.f32 1.0, %v2904_v30  ;;  %2913 = verf.f32 %v1162_v8  ;;  %v3596_v29 = vadd.f32 %v2477_v32, %v3491_v3  ;;  %v1076_v23 = vpop.f32.mrb[27].mxu1  ;;  %2540 = vmatprep.mubr.f32.mxu0 %v1249_v28 }
 0x20c   : > { %2915 = verf.f32 %v1161_v63  ;;  %v1077_v39 = vadd.f32 %v3491_v3, %v1076_v23  ;;  %2541 = vmatmul.mubr.f32.gmra.mrb[48].mxu0 %v1250_v34  ;;  %v1252_v33 = vmul.f32 %v1220_v31, %v1124_v38 }
 0x20d   : > { %v2906_v40 = vpop.eup %2905  ;;  %v1164_v41 = vmul.f32 0.70710677, %v3596_v29  ;;  %v1251_v35 = vmul.f32 %v1219_v37, %v1123_v36  ;;  %v1132_v24 = vmul.f32 0.5, %v3596_v29 }
 0x20e   : > { %v2908_v44 = vpop.eup %2907  ;;  %v1222_v45 = vadd.f32 1.0, %v2906_v40  ;;  %v1163_v2 = vmul.f32 0.70710677, %v1077_v39  ;;  %v2480_v46 = vpop.f32.mrb[28].mxu1  ;;  %v1131_v19 = vmul.f32 0.5, %v1077_v39  ;;  %v1681_v40 = vld [vmem:[%s3882_s7 + $0x40] sm:$0xff] }
 0x20f   : > { %v1221_v49 = vadd.f32 1.0, %v2908_v44  ;;  %2917 = verf.f32 %v1164_v41  ;;  %v1092_v50 = vadd.f32 %v2480_v46, %v3491_v3  ;;  %v1086_v43 = vpop.f32.mrb[29].mxu1  ;;  %2543 = vmatprep.mubr.f32.mxu0 %v1251_v35  ;;  %v1682_v41 = vld [vmem:[%s3882_s7 + $0x48] sm:$0xff]  ;;  %v1683_v44 = vld [vmem:[%s3882_s7 + $0x50] sm:$0xff]  ;;  %v1685_v46 = vld [vmem:[%s3882_s7 + $0x60] sm:$0xff] }
 0x210   : > { %2919 = verf.f32 %v1163_v2  ;;  %v1087_v52 = vadd.f32 %v3491_v3, %v1086_v43  ;;  %2544 = vmatmul.mubr.f32.gmra.mrb[50].mxu0 %v1252_v33  ;;  %v1254_v60 = vmul.f32 %v1222_v45, %v1126_v51  ;;  %v2728_v35 = vpack.c.bf16 %v1682_v41, %v1681_v40  ;;  %v1684_v45 = vld [vmem:[%s3882_s7 + $0x58] sm:$0xff]  ;;  %v1686_v33 = vld [vmem:[%s3882_s7 + $0x68] sm:$0xff]  ;;  %v3639_v51 = vld [vmem:[%s3881_s6] ss:$0 sm:$0xff] }
 0x211   : > { %v2910_v53 = vpop.eup %2909  ;;  %v1166_v54 = vmul.f32 0.70710677, %v1092_v50  ;;  %v1253_v55 = vmul.f32 %v1221_v49, %v1125_v47  ;;  %v1134_v30 = vmul.f32 0.5, %v1092_v50  ;;  %v2732_v2 = vpack.c.bf16 %v1684_v45, %v1683_v44  ;;  %v1687_v49 = vld [vmem:[%s3882_s7 + $0x70] sm:$0xff]  ;;  %v1688_v50 = vld [vmem:[%s3882_s7 + $0x78] sm:$0xff] }
 0x212   : > { %v2912_v56 = vpop.eup %2911  ;;  %v1224_v57 = vadd.f32 1.0, %v2910_v53  ;;  %v1165_v61 = vmul.f32 0.70710677, %v1087_v52  ;;  %v2483_v62 = vpop.f32.mrb[30].mxu1  ;;  %v1133_v28 = vmul.f32 0.5, %v1087_v52  ;;  %2748 = vmatprep.subr.bf16.mxu1 %v2728_v35  ;;  %2729 = vmatprep.subr.bf16.mxu0 %v2728_v35  ;;  %v2736_v47 = vpack.c.bf16 %v1686_v33, %v1685_v46 }
 0x213   : > { %v1223_v5 = vadd.f32 1.0, %v2912_v56  ;;  %2921 = verf.f32 %v1166_v54  ;;  %v1102_v6 = vadd.f32 %v2483_v62, %v3491_v3  ;;  %v1096_v59 = vpop.f32.mrb[31].mxu1  ;;  %2546 = vmatprep.mubr.f32.mxu0 %v1253_v55  ;;  %2756 = vmatpush3.bf16.msra.mxu1 %v2728_v35  ;;  %v2740_v43 = vpack.c.bf16 %v1688_v50, %v1687_v49 }
 0x214   : > { %2923 = verf.f32 %v1165_v61  ;;  %v1097_v4 = vadd.f32 %v3491_v3, %v1096_v59  ;;  %2547 = vmatmul.mubr.f32.gmra.mrb[52].mxu0 %v1254_v60  ;;  %v1256_v15 = vmul.f32 %v1224_v57, %v1128_v48  ;;  %2749 = vmatprep.subr.bf16.mxu1 %v2732_v2 }
 0x215   : > { %v2914_v7 = vpop.eup %2913  ;;  %v1168_v9 = vmul.f32 0.70710677, %v1102_v6  ;;  %v1255_v10 = vmul.f32 %v1223_v5, %v1127_v0  ;;  %v1136_v29 = vmul.f32 0.5, %v1102_v6  ;;  %2731 = vmatpush3.bf16.msra.mxu0 %v2728_v35 }
 0x216   : > { %v2916_v11 = vpop.eup %2915  ;;  %v1226_v58 = vadd.f32 1.0, %v2914_v7  ;;  %v1167_v14 = vmul.f32 0.70710677, %v1097_v4  ;;  %v1135_v37 = vmul.f32 0.5, %v1097_v4  ;;  %2733 = vmatprep.subr.bf16.mxu0 %v2732_v2 }
 0x217   : > { %v1225_v16 = vadd.f32 1.0, %v2916_v11  ;;  %2925 = verf.f32 %v1168_v9  ;;  %2549 = vmatprep.mubr.f32.mxu0 %v1255_v10  ;;  %2757 = vmatpush3.bf16.msra.mxu1 %v2732_v2 }
 0x218   : > { %2927 = verf.f32 %v1167_v14  ;;  %2550 = vmatmul.mubr.f32.gmra.mrb[54].mxu0 %v1256_v15  ;;  %v1258_v21 = vmul.f32 %v1226_v58, %v1130_v18  ;;  %2750 = vmatprep.subr.bf16.mxu1 %v2736_v47 }
 0x219   : > { %v2918_v1 = vpop.eup %2917  ;;  %v1257_v20 = vmul.f32 %v1225_v16, %v1129_v12  ;;  %2735 = vmatpush3.bf16.msra.mxu0 %v2732_v2 }
 0x21a   : > { %v2920_v3 = vpop.eup %2919  ;;  %v1228_v42 = vadd.f32 1.0, %v2918_v1  ;;  %2737 = vmatprep.subr.bf16.mxu0 %v2736_v47 }
 0x21b   : > { %v1227_v22 = vadd.f32 1.0, %v2920_v3  ;;  %2552 = vmatprep.mubr.f32.mxu0 %v1257_v20  ;;  %2758 = vmatpush3.bf16.msra.mxu1 %v2736_v47 }
 0x21c   : > { %2553 = vmatmul.mubr.f32.gmra.mrb[56].mxu0 %v1258_v21  ;;  %v1260_v8 = vmul.f32 %v1228_v42, %v1132_v24  ;;  %2751 = vmatprep.subr.bf16.mxu1 %v2740_v43 }
 0x21d   : > { %v2922_v25 = vpop.eup %2921  ;;  %v1259_v13 = vmul.f32 %v1227_v22, %v1131_v19  ;;  %2739 = vmatpush3.bf16.msra.mxu0 %v2736_v47 }
 0x21e   : > { %v2924_v26 = vpop.eup %2923  ;;  %v1230_v27 = vadd.f32 1.0, %v2922_v25  ;;  %2741 = vmatprep.subr.bf16.mxu0 %v2740_v43 }
 0x21f   : > { %v1229_v17 = vadd.f32 1.0, %v2924_v26  ;;  %2555 = vmatprep.mubr.f32.mxu0 %v1259_v13  ;;  %2759 = vmatpush3.bf16.msra.mxu1 %v2740_v43 }
 0x220   : > { %2556 = vmatmul.mubr.f32.gmra.mrb[58].mxu0 %v1260_v8  ;;  %v1262_v36 = vmul.f32 %v1230_v27, %v1134_v30 }
 0x221   : > { %v2926_v31 = vpop.eup %2925  ;;  %v1261_v63 = vmul.f32 %v1229_v17, %v1133_v28  ;;  %2743 = vmatpush3.bf16.msra.mxu0 %v2740_v43 }
 0x222   : > { %v2928_v32 = vpop.eup %2927  ;;  %v1232_v34 = vadd.f32 1.0, %v2926_v31 }
 0x223   : > { %v1231_v23 = vadd.f32 1.0, %v2928_v32  ;;  %2558 = vmatprep.mubr.f32.mxu0 %v1261_v63 }
 0x224   : > { %2559 = vmatmul.mubr.f32.gmra.mrb[60].mxu0 %v1262_v36  ;;  %v1264_v39 = vmul.f32 %v1232_v34, %v1136_v29 }
 0x225   : > { %v1263_v38 = vmul.f32 %v1231_v23, %v1135_v37 }
 0x227   : > { %2561 = vmatprep.mubr.f32.mxu0 %v1263_v38 }
 0x228   : > { %2562 = vmatmul.mubr.f32.gmra.mrb[62].mxu0 %v1264_v39 }
 0x2bf   : > { %v2518_v52 = vpop.f32.mrb[32].mxu0 }
 0x2c0   : > { %v1360_v53 = vadd.f32 %v2518_v52, %v3639_v51  ;;  %v1354_v54 = vpop.f32.mrb[33].mxu0 }
 0x2c1   : > { %v1355_v55 = vadd.f32 %v3639_v51, %v1354_v54 }
 0x2c2   : > { %v1546_v56 = vmul.f32 0.70710677, %v1360_v53  ;;  %v1514_v24 = vmul.f32 0.5, %v1360_v53 }
 0x2c3   : > { %v1545_v57 = vmul.f32 0.70710677, %v1355_v55  ;;  %v2521_v61 = vpop.f32.mrb[34].mxu0  ;;  %v1513_v42 = vmul.f32 0.5, %v1355_v55 }
 0x2c4   : > { %2929 = verf.f32 %v1546_v56  ;;  %v1370_v62 = vadd.f32 %v2521_v61, %v3639_v51  ;;  %v1364_v60 = vpop.f32.mrb[35].mxu0 }
 0x2c5   : > { %2931 = verf.f32 %v1545_v57  ;;  %v1365_v0 = vadd.f32 %v3639_v51, %v1364_v60 }
 0x2c6   : > { %v1548_v5 = vmul.f32 0.70710677, %v1370_v62  ;;  %v1516_v37 = vmul.f32 0.5, %v1370_v62 }
 0x2c7   : > { %v1547_v6 = vmul.f32 0.70710677, %v1365_v0  ;;  %v2524_v59 = vpop.f32.mrb[36].mxu0  ;;  %v1515_v63 = vmul.f32 0.5, %v1365_v0 }
 0x2c8   : > { %2933 = verf.f32 %v1548_v5  ;;  %v1380_v48 = vadd.f32 %v2524_v59, %v3639_v51  ;;  %v1374_v4 = vpop.f32.mrb[37].mxu0 }
 0x2c9   : > { %2935 = verf.f32 %v1547_v6  ;;  %v1375_v7 = vadd.f32 %v3639_v51, %v1374_v4 }
 0x2ca   : > { %v1550_v9 = vmul.f32 0.70710677, %v1380_v48  ;;  %v1518_v49 = vmul.f32 0.5, %v1380_v48 }
 0x2cb   : > { %v1549_v10 = vmul.f32 0.70710677, %v1375_v7  ;;  %v2527_v11 = vpop.f32.mrb[38].mxu0  ;;  %v1517_v2 = vmul.f32 0.5, %v1375_v7 }
 0x2cc   : > { %2937 = verf.f32 %v1550_v9  ;;  %v3648_v58 = vadd.f32 %v2527_v11, %v3639_v51  ;;  %v1384_v14 = vpop.f32.mrb[39].mxu0 }
 0x2cd   : > { %2939 = verf.f32 %v1549_v10  ;;  %v1385_v15 = vadd.f32 %v3639_v51, %v1384_v14 }
 0x2ce   : > { %v2930_v12 = vpop.eup %2929  ;;  %v1552_v16 = vmul.f32 0.70710677, %v3648_v58  ;;  %v1520_v6 = vmul.f32 0.5, %v3648_v58 }
 0x2cf   : > { %v2932_v18 = vpop.eup %2931  ;;  %v1610_v1 = vadd.f32 1.0, %v2930_v12  ;;  %v1551_v20 = vmul.f32 0.70710677, %v1385_v15  ;;  %v2530_v3 = vpop.f32.mrb[40].mxu0  ;;  %v1519_v62 = vmul.f32 0.5, %v1385_v15 }
 0x2d0   : > { %v1609_v21 = vadd.f32 1.0, %v2932_v18  ;;  %2941 = verf.f32 %v1552_v16  ;;  %v3653_v19 = vadd.f32 %v2530_v3, %v3639_v51  ;;  %v1394_v22 = vpop.f32.mrb[41].mxu0 }
 0x2d1   : > { %2943 = verf.f32 %v1551_v20  ;;  %v1395_v25 = vadd.f32 %v3639_v51, %v1394_v22  ;;  %v1642_v28 = vmul.f32 %v1610_v1, %v1514_v24 }
 0x2d2   : > { %v2934_v13 = vpop.eup %2933  ;;  %v1554_v26 = vmul.f32 0.70710677, %v3653_v19  ;;  %v1641_v27 = vmul.f32 %v1609_v21, %v1513_v42  ;;  %v1522_v1 = vmul.f32 0.5, %v3653_v19 }
 0x2d3   : > { %v2936_v8 = vpop.eup %2935  ;;  %v1612_v17 = vadd.f32 1.0, %v2934_v13  ;;  %v1553_v30 = vmul.f32 0.70710677, %v1395_v25  ;;  %v2533_v31 = vpop.f32.mrb[42].mxu0  ;;  %v1521_v12 = vmul.f32 0.5, %v1395_v25 }
 0x2d4   : > { %v1611_v32 = vadd.f32 1.0, %v2936_v8  ;;  %2945 = verf.f32 %v1554_v26  ;;  %v3658_v34 = vadd.f32 %v2533_v31, %v3639_v51  ;;  %v1404_v36 = vpop.f32.mrb[43].mxu0  ;;  %2596 = vmatprep.mubr.f32.mxu0 %v1641_v27 }
 0x2d5   : > { %2947 = verf.f32 %v1553_v30  ;;  %v3661_v23 = vadd.f32 %v3639_v51, %v1404_v36  ;;  %2597 = vmatmul.mubr.f32.vlgmr.msra.gmra.mrb[64].mxu0 %v1642_v28  ;;  %v1644_v45 = vmul.f32 %v1612_v17, %v1516_v37 }
 0x2d6   : > { %v2938_v29 = vpop.eup %2937  ;;  %v1556_v38 = vmul.f32 0.70710677, %v3658_v34  ;;  %v1643_v39 = vmul.f32 %v1611_v32, %v1515_v63  ;;  %v1524_v17 = vmul.f32 0.5, %v3658_v34 }
 0x2d7   : > { %v2940_v40 = vpop.eup %2939  ;;  %v1614_v41 = vadd.f32 1.0, %v2938_v29  ;;  %v1555_v35 = vmul.f32 0.70710677, %v3661_v23  ;;  %v2536_v44 = vpop.f32.mrb[44].mxu0  ;;  %v1523_v27 = vmul.f32 0.5, %v3661_v23 }
 0x2d8   : > { %v1613_v46 = vadd.f32 1.0, %v2940_v40  ;;  %2949 = verf.f32 %v1556_v38  ;;  %v3666_v33 = vadd.f32 %v2536_v44, %v3639_v51  ;;  %v1414_v47 = vpop.f32.mrb[45].mxu0  ;;  %2599 = vmatprep.mubr.f32.mxu0 %v1643_v39 }
 0x2d9   : > { %2951 = verf.f32 %v1555_v35  ;;  %v3669_v50 = vadd.f32 %v3639_v51, %v1414_v47  ;;  %2600 = vmatmul.mubr.f32.gmra.mrb[66].mxu0 %v1644_v45  ;;  %v1646_v61 = vmul.f32 %v1614_v41, %v1518_v49 }
 0x2da   : > { %v2942_v43 = vpop.eup %2941  ;;  %v1558_v52 = vmul.f32 0.70710677, %v3666_v33  ;;  %v1645_v53 = vmul.f32 %v1613_v46, %v1517_v2  ;;  %v1526_v35 = vmul.f32 0.5, %v3666_v33 }
 0x2db   : > { %v2944_v54 = vpop.eup %2943  ;;  %v1616_v55 = vadd.f32 1.0, %v2942_v43  ;;  %v1557_v56 = vmul.f32 0.70710677, %v3669_v50  ;;  %v2539_v57 = vpop.f32.mrb[46].mxu0  ;;  %v1525_v39 = vmul.f32 0.5, %v3669_v50 }
 0x2dc   : > { %v1615_v60 = vadd.f32 1.0, %v2944_v54  ;;  %2953 = verf.f32 %v1558_v52  ;;  %v3674_v0 = vadd.f32 %v2539_v57, %v3639_v51  ;;  %v1424_v5 = vpop.f32.mrb[47].mxu0  ;;  %2602 = vmatprep.mubr.f32.mxu0 %v1645_v53 }
 0x2dd   : > { %2955 = verf.f32 %v1557_v56  ;;  %v3678_v59 = vadd.f32 %v3639_v51, %v1424_v5  ;;  %2603 = vmatmul.mubr.f32.gmra.mrb[68].mxu0 %v1646_v61  ;;  %v1648_v10 = vmul.f32 %v1616_v55, %v1520_v6 }
 0x2de   : > { %v2946_v48 = vpop.eup %2945  ;;  %v1560_v4 = vmul.f32 0.70710677, %v3674_v0  ;;  %v1647_v7 = vmul.f32 %v1615_v60, %v1519_v62  ;;  %v1528_v56 = vmul.f32 0.5, %v3674_v0 }
 0x2df   : > { %v2948_v9 = vpop.eup %2947  ;;  %v1618_v11 = vadd.f32 1.0, %v2946_v48  ;;  %v1559_v14 = vmul.f32 0.70710677, %v3678_v59  ;;  %v2542_v15 = vpop.f32.mrb[48].mxu0  ;;  %v1527_v53 = vmul.f32 0.5, %v3678_v59 }
 0x2e0   : > { %v1617_v16 = vadd.f32 1.0, %v2948_v9  ;;  %2957 = verf.f32 %v1560_v4  ;;  %v3683_v58 = vadd.f32 %v2542_v15, %v3639_v51  ;;  %v1434_v18 = vpop.f32.mrb[49].mxu0  ;;  %2605 = vmatprep.mubr.f32.mxu1 %v1647_v7 }
 0x2e1   : > { %2959 = verf.f32 %v1559_v14  ;;  %v3687_v20 = vadd.f32 %v3639_v51, %v1434_v18  ;;  %2606 = vmatmul.mubr.f32.vlgmr.msra.gmra.mrb[32].mxu1 %v1648_v10  ;;  %v1650_v26 = vmul.f32 %v1618_v11, %v1522_v1 }
 0x2e2   : > { %v2950_v3 = vpop.eup %2949  ;;  %v1562_v42 = vmul.f32 0.70710677, %v3683_v58  ;;  %v1649_v21 = vmul.f32 %v1617_v16, %v1521_v12  ;;  %v1530_v11 = vmul.f32 0.5, %v3683_v58 }
 0x2e3   : > { %v2952_v22 = vpop.eup %2951  ;;  %v1620_v24 = vadd.f32 1.0, %v2950_v3  ;;  %v1561_v25 = vmul.f32 0.70710677, %v3687_v20  ;;  %v2545_v13 = vpop.f32.mrb[50].mxu0  ;;  %v1529_v7 = vmul.f32 0.5, %v3687_v20 }
 0x2e4   : > { %v1619_v8 = vadd.f32 1.0, %v2952_v22  ;;  %2961 = verf.f32 %v1562_v42  ;;  %v3693_v19 = vadd.f32 %v2545_v13, %v3639_v51  ;;  %v1444_v28 = vpop.f32.mrb[51].mxu0  ;;  %2608 = vmatprep.mubr.f32.mxu1 %v1649_v21 }
 0x2e5   : > { %2963 = verf.f32 %v1561_v25  ;;  %v3697_v30 = vadd.f32 %v3639_v51, %v1444_v28  ;;  %2609 = vmatmul.mubr.f32.gmra.mrb[34].mxu1 %v1650_v26  ;;  %v1652_v38 = vmul.f32 %v1620_v24, %v1524_v17 }
 0x2e6   : > { %v2954_v31 = vpop.eup %2953  ;;  %v1564_v63 = vmul.f32 0.70710677, %v3693_v19  ;;  %v1651_v32 = vmul.f32 %v1619_v8, %v1523_v27  ;;  %v1532_v25 = vmul.f32 0.5, %v3693_v19 }
 0x2e7   : > { %v2956_v36 = vpop.eup %2955  ;;  %v1622_v37 = vadd.f32 1.0, %v2954_v31  ;;  %v1563_v23 = vmul.f32 0.70710677, %v3697_v30  ;;  %v2548_v29 = vpop.f32.mrb[52].mxu0  ;;  %v1531_v21 = vmul.f32 0.5, %v3697_v30 }
 0x2e8   : > { %v1621_v40 = vadd.f32 1.0, %v2956_v36  ;;  %2965 = verf.f32 %v1564_v63  ;;  %v3703_v34 = vadd.f32 %v2548_v29, %v3639_v51  ;;  %v1454_v41 = vpop.f32.mrb[53].mxu0  ;;  %2611 = vmatprep.mubr.f32.mxu1 %v1651_v32 }
 0x2e9   : > { %2967 = verf.f32 %v1563_v23  ;;  %v3707_v44 = vadd.f32 %v3639_v51, %v1454_v41  ;;  %2612 = vmatmul.mubr.f32.gmra.mrb[36].mxu1 %v1652_v38  ;;  %v1654_v52 = vmul.f32 %v1622_v37, %v1526_v35 }
 0x2ea   : > { %v2958_v45 = vpop.eup %2957  ;;  %v1566_v2 = vmul.f32 0.70710677, %v3703_v34  ;;  %v1653_v46 = vmul.f32 %v1621_v40, %v1525_v39  ;;  %v1534_v23 = vmul.f32 0.5, %v3703_v34 }
 0x2eb   : > { %v2960_v47 = vpop.eup %2959  ;;  %v1624_v49 = vadd.f32 1.0, %v2958_v45  ;;  %v1565_v50 = vmul.f32 0.70710677, %v3707_v44  ;;  %v2551_v43 = vpop.f32.mrb[54].mxu0  ;;  %v1533_v32 = vmul.f32 0.5, %v3707_v44 }
 0x2ec   : > { %v1623_v54 = vadd.f32 1.0, %v2960_v47  ;;  %2969 = verf.f32 %v1566_v2  ;;  %v3713_v33 = vadd.f32 %v2551_v43, %v3639_v51  ;;  %v1464_v55 = vpop.f32.mrb[55].mxu0  ;;  %2614 = vmatprep.mubr.f32.mxu1 %v1653_v46 }
 0x2ed   : > { %2971 = verf.f32 %v1565_v50  ;;  %v3717_v57 = vadd.f32 %v3639_v51, %v1464_v55  ;;  %2615 = vmatmul.mubr.f32.gmra.mrb[38].mxu1 %v1654_v52  ;;  %v1656_v4 = vmul.f32 %v1624_v49, %v1528_v56 }
 0x2ee   : > { %v2962_v61 = vpop.eup %2961  ;;  %v1568_v62 = vmul.f32 0.70710677, %v3713_v33  ;;  %v1655_v60 = vmul.f32 %v1623_v54, %v1527_v53  ;;  %v1536_v34 = vmul.f32 0.5, %v3713_v33 }
 0x2ef   : > { %v2964_v5 = vpop.eup %2963  ;;  %v1626_v6 = vadd.f32 1.0, %v2962_v61  ;;  %v1567_v59 = vmul.f32 0.70710677, %v3717_v57  ;;  %v2554_v48 = vpop.f32.mrb[56].mxu0  ;;  %v1535_v46 = vmul.f32 0.5, %v3717_v57 }
 0x2f0   : > { %v1625_v9 = vadd.f32 1.0, %v2964_v5  ;;  %2973 = verf.f32 %v1568_v62  ;;  %v3723_v0 = vadd.f32 %v2554_v48, %v3639_v51  ;;  %v1474_v10 = vpop.f32.mrb[57].mxu0  ;;  %2617 = vmatprep.mubr.f32.mxu1 %v1655_v60 }
 0x2f1   : > { %2975 = verf.f32 %v1567_v59  ;;  %v3727_v14 = vadd.f32 %v3639_v51, %v1474_v10  ;;  %2618 = vmatmul.mubr.f32.gmra.mrb[40].mxu1 %v1656_v4  ;;  %v1658_v42 = vmul.f32 %v1626_v6, %v1530_v11 }
 0x2f2   : > { %v2966_v15 = vpop.eup %2965  ;;  %v1570_v12 = vmul.f32 0.70710677, %v3723_v0  ;;  %v1657_v16 = vmul.f32 %v1625_v9, %v1529_v7  ;;  %v1538_v5 = vmul.f32 0.5, %v3723_v0 }
 0x2f3   : > { %v2968_v18 = vpop.eup %2967  ;;  %v1628_v1 = vadd.f32 1.0, %v2966_v15  ;;  %v1569_v20 = vmul.f32 0.70710677, %v3727_v14  ;;  %v2557_v3 = vpop.f32.mrb[58].mxu0  ;;  %v1537_v57 = vmul.f32 0.5, %v3727_v14 }
 0x2f4   : > { %v1627_v22 = vadd.f32 1.0, %v2968_v18  ;;  %2977 = verf.f32 %v1570_v12  ;;  %v3733_v58 = vadd.f32 %v2557_v3, %v3639_v51  ;;  %v1484_v24 = vpop.f32.mrb[59].mxu0  ;;  %2620 = vmatprep.mubr.f32.mxu1 %v1657_v16 }
 0x2f5   : > { %2979 = verf.f32 %v1569_v20  ;;  %v1485_v13 = vadd.f32 %v3639_v51, %v1484_v24  ;;  %2621 = vmatmul.mubr.f32.gmra.mrb[42].mxu1 %v1658_v42  ;;  %v1660_v63 = vmul.f32 %v1628_v1, %v1532_v25 }
 0x2f6   : > { %v2970_v26 = vpop.eup %2969  ;;  %v1572_v27 = vmul.f32 0.70710677, %v3733_v58  ;;  %v1659_v8 = vmul.f32 %v1627_v22, %v1531_v21  ;;  %v1540_v9 = vmul.f32 0.5, %v3733_v58 }
 0x2f7   : > { %v2972_v28 = vpop.eup %2971  ;;  %v1630_v17 = vadd.f32 1.0, %v2970_v26  ;;  %v1571_v30 = vmul.f32 0.70710677, %v1485_v13  ;;  %v2560_v31 = vpop.f32.mrb[60].mxu0  ;;  %v1539_v4 = vmul.f32 0.5, %v1485_v13 }
 0x2f8   : > { %v1629_v36 = vadd.f32 1.0, %v2972_v28  ;;  %2981 = verf.f32 %v1572_v27  ;;  %v1500_v37 = vadd.f32 %v2560_v31, %v3639_v51  ;;  %v1494_v19 = vpop.f32.mrb[61].mxu0  ;;  %2623 = vmatprep.mubr.f32.mxu1 %v1659_v8  ;;  %v3753_v26 = vld [vmem:[%s3883_s8] ss:$0 sm:$0xff] }
 0x2f9   : > { %2983 = verf.f32 %v1571_v30  ;;  %v1495_v29 = vadd.f32 %v3639_v51, %v1494_v19  ;;  %2624 = vmatmul.mubr.f32.gmra.mrb[44].mxu1 %v1660_v63  ;;  %v1662_v44 = vmul.f32 %v1630_v17, %v1534_v23 }
 0x2fa   : > { %v2974_v38 = vpop.eup %2973  ;;  %v1574_v39 = vmul.f32 0.70710677, %v1500_v37  ;;  %v1661_v40 = vmul.f32 %v1629_v36, %v1533_v32  ;;  %v1542_v18 = vmul.f32 0.5, %v1500_v37 }
 0x2fb   : > { %v2976_v41 = vpop.eup %2975  ;;  %v1632_v35 = vadd.f32 1.0, %v2974_v38  ;;  %v1573_v45 = vmul.f32 0.70710677, %v1495_v29  ;;  %v2563_v2 = vpop.f32.mrb[62].mxu0  ;;  %v1541_v16 = vmul.f32 0.5, %v1495_v29 }
 0x2fc   : > { %v1631_v47 = vadd.f32 1.0, %v2976_v41  ;;  %2985 = verf.f32 %v1574_v39  ;;  %v1510_v49 = vadd.f32 %v2563_v2, %v3639_v51  ;;  %v1504_v50 = vpop.f32.mrb[63].mxu0  ;;  %2626 = vmatprep.mubr.f32.mxu1 %v1661_v40 }
 0x2fd   : > { %2987 = verf.f32 %v1573_v45  ;;  %v1505_v43 = vadd.f32 %v3639_v51, %v1504_v50  ;;  %2627 = vmatmul.mubr.f32.gmra.mrb[46].mxu1 %v1662_v44  ;;  %v1664_v62 = vmul.f32 %v1632_v35, %v1536_v34 }
 0x2fe   : > { %v2978_v52 = vpop.eup %2977  ;;  %v1576_v53 = vmul.f32 0.70710677, %v1510_v49  ;;  %v1663_v54 = vmul.f32 %v1631_v47, %v1535_v46  ;;  %v1544_v24 = vmul.f32 0.5, %v1510_v49 }
 0x2ff   : > { %v2980_v55 = vpop.eup %2979  ;;  %v1634_v56 = vadd.f32 1.0, %v2978_v52  ;;  %v1575_v61 = vmul.f32 0.70710677, %v1505_v43  ;;  %v1543_v22 = vmul.f32 0.5, %v1505_v43 }
 0x300   : > { %v1633_v60 = vadd.f32 1.0, %v2980_v55  ;;  %2989 = verf.f32 %v1576_v53  ;;  %2629 = vmatprep.mubr.f32.mxu1 %v1663_v54 }
 0x301   : > { %2991 = verf.f32 %v1575_v61  ;;  %2630 = vmatmul.mubr.f32.gmra.mrb[48].mxu1 %v1664_v62  ;;  %v1666_v48 = vmul.f32 %v1634_v56, %v1538_v5 }
 0x302   : > { %v2982_v33 = vpop.eup %2981  ;;  %v1665_v6 = vmul.f32 %v1633_v60, %v1537_v57 }
 0x303   : > { %v2984_v51 = vpop.eup %2983  ;;  %v1636_v59 = vadd.f32 1.0, %v2982_v33 }
 0x304   : > { %v1635_v7 = vadd.f32 1.0, %v2984_v51  ;;  %2632 = vmatprep.mubr.f32.mxu1 %v1665_v6 }
 0x305   : > { %2633 = vmatmul.mubr.f32.gmra.mrb[50].mxu1 %v1666_v48  ;;  %v1668_v12 = vmul.f32 %v1636_v59, %v1540_v9 }
 0x306   : > { %v2986_v10 = vpop.eup %2985  ;;  %v1667_v11 = vmul.f32 %v1635_v7, %v1539_v4 }
 0x307   : > { %v2988_v14 = vpop.eup %2987  ;;  %v1638_v15 = vadd.f32 1.0, %v2986_v10 }
 0x308   : > { %v1637_v0 = vadd.f32 1.0, %v2988_v14  ;;  %2635 = vmatprep.mubr.f32.mxu1 %v1667_v11 }
 0x309   : > { %2636 = vmatmul.mubr.f32.gmra.mrb[52].mxu1 %v1668_v12  ;;  %v1670_v21 = vmul.f32 %v1638_v15, %v1542_v18 }
 0x30a   : > { %v2990_v1 = vpop.eup %2989  ;;  %v1669_v20 = vmul.f32 %v1637_v0, %v1541_v16 }
 0x30b   : > { %v2992_v3 = vpop.eup %2991  ;;  %v1640_v42 = vadd.f32 1.0, %v2990_v1 }
 0x30c   : > { %v1639_v58 = vadd.f32 1.0, %v2992_v3  ;;  %2638 = vmatprep.mubr.f32.mxu1 %v1669_v20 }
 0x30d   : > { %2639 = vmatmul.mubr.f32.gmra.mrb[54].mxu1 %v1670_v21  ;;  %v1672_v13 = vmul.f32 %v1640_v42, %v1544_v24 }
 0x30e   : > { %v1671_v25 = vmul.f32 %v1639_v58, %v1543_v22 }
 0x310   : > { %2641 = vmatprep.mubr.f32.mxu1 %v1671_v25 }
 0x311   : > { %2642 = vmatmul.mubr.f32.gmra.mrb[56].mxu1 %v1672_v13 }
 0x3a8   : > { %v2598_v27 = vpop.f32.mrb[64].mxu0 }
 0x3a9   : > { %v1768_v8 = vadd.f32 %v2598_v27, %v3753_v26  ;;  %v1762_v28 = vpop.f32.mrb[65].mxu0 }
 0x3aa   : > { %v1763_v17 = vadd.f32 %v3753_v26, %v1762_v28 }
 0x3ab   : > { %v2137_v30 = vclamps-f32 %v1768_v8, 1.0 }
 0x3ac   : > { %v2136_v31 = vclamps-f32 %v1763_v17, 1.0  ;;  %v2601_v63 = vpop.f32.mrb[66].mxu0 }
 0x3ad   : > { %1986 = vst [vmem:[%s3759_s29 + $0x8] sm:$0xff] %v2137_v30  ;;  %v1778_v32 = vadd.f32 %v2601_v63, %v3753_v26  ;;  %v1772_v36 = vpop.f32.mrb[67].mxu0 }
 0x3ae   : > { %1985 = vst [vmem:[%s3759_s29] sm:$0xff] %v2136_v31  ;;  %v1773_v37 = vadd.f32 %v3753_v26, %v1772_v36 }
 0x3af   : > { %v2139_v19 = vclamps-f32 %v1778_v32, 1.0 }
 0x3b0   : > { %v2138_v23 = vclamps-f32 %v1773_v37, 1.0  ;;  %v2604_v29 = vpop.f32.mrb[68].mxu0 }
 0x3b1   : > { %1988 = vst [vmem:[%s3759_s29 + $0x18] sm:$0xff] %v2139_v19  ;;  %v1788_v38 = vadd.f32 %v2604_v29, %v3753_v26  ;;  %v1782_v39 = vpop.f32.mrb[69].mxu0 }
 0x3b2   : > { %1987 = vst [vmem:[%s3759_s29 + $0x10] sm:$0xff] %v2138_v23  ;;  %v1783_v40 = vadd.f32 %v3753_v26, %v1782_v39 }
 0x3b3   : > { %v2141_v41 = vclamps-f32 %v1788_v38, 1.0 }
 0x3b4   : > { %v2140_v35 = vclamps-f32 %v1783_v40, 1.0  ;;  %v2607_v45 = vpop.f32.mrb[32].mxu1 }
 0x3b5   : > { %1990 = vst [vmem:[%s3759_s29 + $0x28] sm:$0xff] %v2141_v41  ;;  %v1798_v2 = vadd.f32 %v2607_v45, %v3753_v26  ;;  %v1792_v44 = vpop.f32.mrb[33].mxu1 }
 0x3b6   : > { %1989 = vst [vmem:[%s3759_s29 + $0x20] sm:$0xff] %v2140_v35  ;;  %v1793_v46 = vadd.f32 %v3753_v26, %v1792_v44 }
 0x3b7   : > { %v2143_v47 = vclamps-f32 %v1798_v2, 1.0 }
 0x3b8   : > { %v2142_v49 = vclamps-f32 %v1793_v46, 1.0  ;;  %v2610_v50 = vpop.f32.mrb[34].mxu1 }
 0x3b9   : > { %1992 = vst [vmem:[%s3759_s29 + $0x38] sm:$0xff] %v2143_v47  ;;  %v1808_v34 = vadd.f32 %v2610_v50, %v3753_v26  ;;  %v1802_v43 = vpop.f32.mrb[35].mxu1 }
 0x3ba   : > { %1991 = vst [vmem:[%s3759_s29 + $0x30] sm:$0xff] %v2142_v49  ;;  %v1803_v52 = vadd.f32 %v3753_v26, %v1802_v43 }
 0x3bb   : > { %v2145_v53 = vclamps-f32 %v1808_v34, 1.0 }
 0x3bc   : > { %v2144_v54 = vclamps-f32 %v1803_v52, 1.0  ;;  %v2613_v55 = vpop.f32.mrb[36].mxu1 }
 0x3bd   : > { %1994 = vst [vmem:[%s3759_s29 + $0x48] sm:$0xff] %v2145_v53  ;;  %v1818_v56 = vadd.f32 %v2613_v55, %v3753_v26  ;;  %v1812_v61 = vpop.f32.mrb[37].mxu1 }
 0x3be   : > { %1993 = vst [vmem:[%s3759_s29 + $0x40] sm:$0xff] %v2144_v54  ;;  %v1813_v62 = vadd.f32 %v3753_v26, %v1812_v61 }
 0x3bf   : > { %v2147_v57 = vclamps-f32 %v1818_v56, 1.0 }
 0x3c0   : > { %v2146_v60 = vclamps-f32 %v1813_v62, 1.0  ;;  %v2616_v5 = vpop.f32.mrb[38].mxu1 }
 0x3c1   : > { %1996 = vst [vmem:[%s3759_s29 + $0x58] sm:$0xff] %v2147_v57  ;;  %v1828_v33 = vadd.f32 %v2616_v5, %v3753_v26  ;;  %v1822_v6 = vpop.f32.mrb[39].mxu1 }
 0x3c2   : > { %1995 = vst [vmem:[%s3759_s29 + $0x50] sm:$0xff] %v2146_v60  ;;  %v1823_v51 = vadd.f32 %v3753_v26, %v1822_v6 }
 0x3c3   : > { %v2149_v59 = vclamps-f32 %v1828_v33, 1.0 }
 0x3c4   : > { %v2148_v48 = vclamps-f32 %v1823_v51, 1.0  ;;  %v2619_v4 = vpop.f32.mrb[40].mxu1 }
 0x3c5   : > { %1998 = vst [vmem:[%s3759_s29 + $0x68] sm:$0xff] %v2149_v59  ;;  %v1838_v7 = vadd.f32 %v2619_v4, %v3753_v26  ;;  %v1832_v9 = vpop.f32.mrb[41].mxu1 }
 0x3c6   : > { %1997 = vst [vmem:[%s3759_s29 + $0x60] sm:$0xff] %v2148_v48  ;;  %v1833_v10 = vadd.f32 %v3753_v26, %v1832_v9 }
 0x3c7   : > { %v2151_v11 = vclamps-f32 %v1838_v7, 1.0 }
 0x3c8   : > { %v2150_v14 = vclamps-f32 %v1833_v10, 1.0  ;;  %v2622_v15 = vpop.f32.mrb[42].mxu1 }
 0x3c9   : > { %2000 = vst [vmem:[%s3759_s29 + $0x78] sm:$0xff] %v2151_v11  ;;  %v1848_v12 = vadd.f32 %v2622_v15, %v3753_v26  ;;  %v1842_v16 = vpop.f32.mrb[43].mxu1 }
 0x3ca   : > { %1999 = vst [vmem:[%s3759_s29 + $0x70] sm:$0xff] %v2150_v14  ;;  %v1843_v0 = vadd.f32 %v3753_v26, %v1842_v16 }
 0x3cb   : > { %v2153_v18 = vclamps-f32 %v1848_v12, 1.0 }
 0x3cc   : > { %v2152_v1 = vclamps-f32 %v1843_v0, 1.0  ;;  %v2625_v20 = vpop.f32.mrb[44].mxu1 }
 0x3cd   : > { %2002 = vst [vmem:[%s3759_s29 + $0x88] sm:$0xff] %v2153_v18  ;;  %v1858_v3 = vadd.f32 %v2625_v20, %v3753_v26  ;;  %v1852_v42 = vpop.f32.mrb[45].mxu1 }
 0x3ce   : > { %2001 = vst [vmem:[%s3759_s29 + $0x80] sm:$0xff] %v2152_v1  ;;  %v1853_v21 = vadd.f32 %v3753_v26, %v1852_v42 }
 0x3cf   : > { %v2155_v22 = vclamps-f32 %v1858_v3, 1.0 }
 0x3d0   : > { %v2154_v58 = vclamps-f32 %v1853_v21, 1.0  ;;  %v2628_v24 = vpop.f32.mrb[46].mxu1 }
 0x3d1   : > { %2004 = vst [vmem:[%s3759_s29 + $0x98] sm:$0xff] %v2155_v22  ;;  %v1868_v25 = vadd.f32 %v2628_v24, %v3753_v26  ;;  %v1862_v13 = vpop.f32.mrb[47].mxu1 }
 0x3d2   : > { %2003 = vst [vmem:[%s3759_s29 + $0x90] sm:$0xff] %v2154_v58  ;;  %v1863_v27 = vadd.f32 %v3753_v26, %v1862_v13 }
 0x3d3   : > { %v2157_v8 = vclamps-f32 %v1868_v25, 1.0 }
 0x3d4   : > { %v2156_v28 = vclamps-f32 %v1863_v27, 1.0  ;;  %v2631_v17 = vpop.f32.mrb[48].mxu1 }
 0x3d5   : > { %2006 = vst [vmem:[%s3759_s29 + $0xa8] sm:$0xff] %v2157_v8  ;;  %v1878_v30 = vadd.f32 %v2631_v17, %v3753_v26  ;;  %v1872_v31 = vpop.f32.mrb[49].mxu1 }
 0x3d6   : > { %2005 = vst [vmem:[%s3759_s29 + $0xa0] sm:$0xff] %v2156_v28  ;;  %v1873_v63 = vadd.f32 %v3753_v26, %v1872_v31 }
 0x3d7   : > { %v2159_v32 = vclamps-f32 %v1878_v30, 1.0 }
 0x3d8   : > { %v2158_v36 = vclamps-f32 %v1873_v63, 1.0  ;;  %v2634_v37 = vpop.f32.mrb[50].mxu1 }
 0x3d9   : > { %2008 = vst [vmem:[%s3759_s29 + $0xb8] sm:$0xff] %v2159_v32  ;;  %v1888_v19 = vadd.f32 %v2634_v37, %v3753_v26  ;;  %v1882_v23 = vpop.f32.mrb[51].mxu1 }
 0x3da   : > { %2007 = vst [vmem:[%s3759_s29 + $0xb0] sm:$0xff] %v2158_v36  ;;  %v1883_v29 = vadd.f32 %v3753_v26, %v1882_v23 }
 0x3db   : > { %v2161_v38 = vclamps-f32 %v1888_v19, 1.0 }
 0x3dc   : > { %v2160_v39 = vclamps-f32 %v1883_v29, 1.0  ;;  %v2637_v40 = vpop.f32.mrb[52].mxu1 }
 0x3dd   : > { %2010 = vst [vmem:[%s3759_s29 + $0xc8] sm:$0xff] %v2161_v38  ;;  %v1898_v41 = vadd.f32 %v2637_v40, %v3753_v26  ;;  %v1892_v35 = vpop.f32.mrb[53].mxu1 }
 0x3de   : > { %2009 = vst [vmem:[%s3759_s29 + $0xc0] sm:$0xff] %v2160_v39  ;;  %v1893_v45 = vadd.f32 %v3753_v26, %v1892_v35 }
 0x3df   : > { %v2163_v2 = vclamps-f32 %v1898_v41, 1.0 }
 0x3e0   : > { %v2162_v44 = vclamps-f32 %v1893_v45, 1.0  ;;  %v2640_v46 = vpop.f32.mrb[54].mxu1 }
 0x3e1   : > { %2012 = vst [vmem:[%s3759_s29 + $0xd8] sm:$0xff] %v2163_v2  ;;  %v1908_v47 = vadd.f32 %v2640_v46, %v3753_v26  ;;  %v1902_v49 = vpop.f32.mrb[55].mxu1 }
 0x3e2   : > { %2011 = vst [vmem:[%s3759_s29 + $0xd0] sm:$0xff] %v2162_v44  ;;  %v1903_v50 = vadd.f32 %v3753_v26, %v1902_v49 }
 0x3e3   : > { %v2165_v34 = vclamps-f32 %v1908_v47, 1.0 }
 0x3e4   : > { %v2164_v43 = vclamps-f32 %v1903_v50, 1.0  ;;  %v2643_v52 = vpop.f32.mrb[56].mxu1 }
 0x3e5   : > { %2014 = vst [vmem:[%s3759_s29 + $0xe8] sm:$0xff] %v2165_v34  ;;  %v1918_v53 = vadd.f32 %v2643_v52, %v3753_v26  ;;  %v1912_v54 = vpop.f32.mrb[57].mxu1 }
 0x3e6   : > { %2013 = vst [vmem:[%s3759_s29 + $0xe0] sm:$0xff] %v2164_v43  ;;  %v1913_v55 = vadd.f32 %v3753_v26, %v1912_v54 }
 0x3e7   : > { %v2167_v56 = vclamps-f32 %v1918_v53, 1.0 }
 0x3e8   : > { %v2166_v61 = vclamps-f32 %v1913_v55, 1.0 }
 0x3e9   : > { %2016 = vst [vmem:[%s3759_s29 + $0xf8] sm:$0xff] %v2167_v56 }
 0x3ea   : > { %2015 = vst [vmem:[%s3759_s29 + $0xf0] sm:$0xff] %v2166_v61 }
 0x3eb   : > { %3006 = shalt.err (!%p3003_p3)
}
 0x3ec   : > { %s3007_s24 = scalar_lea.hbm %s3826_s21, 4096  ;;  %s3011_s14 = scalar_lea.hbm %s3884_s9, 8192 }
 0x3ed   : > { %p3008_p4 = scmp.ne.s32.totalorder %s3826_s21, %s3007_s24  ;;  %p3012_p9 = scmp.lt.u32.totalorder %s3826_s21, %s3884_s9 }
 0x3ee   : > { %p3013_p10 = scmp.lt.u32.totalorder %s3011_s14, %s3007_s24  ;;  %p3015_p12 = scmp.lt.u32.totalorder %s3007_s24, %s3826_s21 }
 0x3ef   : > { %p3009_p7 = pnand %p3008_p4, %p3148_p5 }
 0x3f0   : > { %p3014_p11 = por %p3013_p10, %p3012_p9 }
 0x3f1   : > { %p3010_p8 = pneg %p3009_p7 }
 0x3f2   : > { %p3016_p13 = por %p3015_p12, %p3014_p11 }
 0x3f4   : > { %p3017_p0 = pnand %p3016_p13, %p3010_p8 }
 0x3f6   : > { %3020 = shalt.err (!%p3017_p0)
}
 0x3f7   : > { %s3058_s22 = smov 128   ;;  %s3059_s23 = smov 8  }
 0x3f8   : > { %2760 = dma.vmem_to_hbm [thread:$0]  (%p3148_p5), %s3828_s25, 4096, %s3826_s21, %s3834_s13, %s3058_s22, %s3058_s22, %s3059_s23  }
 0x3f9 PF: > { %p2766_p1 = scmp.ge.s32.totalorder %s3055_s12, 2  ;;  %s2046_s26 = sand.u32 1, %s3043_s30  }
 0x3fa   : > { %s2047_s27 = scalar_lea.sflag [#allocation3], %s2046_s26 }
 0x3fb   : > { %p2763_p2 = pnand %p2766_p1, %p3152_p6 }
 0x3fd   : > { %3038 = dma.done.wait (!%p2763_p2), %s2047_s27, 4096  }
 0x3fe   : > { %3040 = vsyncadd (!%p2763_p2), %s2047_s27, 4294963200  ;;  %p19_p3 = scmp.ge.s32.totalorder %s3135_s15, 4   ;;  %s3887_s30 = smov %s3047_s10 }
 0x3ff   : > { %s3888_s10 = smov %s3051_s11  ;;  %s3889_s11 = smov %s3146_s18 }
 0x400   : > { %s3890_s12 = smov %s3135_s15  ;;  %21 = sbr.rel (!%p19_p3) target bundleno = 3 (0x3), region = 91 }
 0x407   :  { %2052 = vsyncpa [#allocation3], 1 }
 0x408   :  { %2054 = vsyncpa [#allocation3 + $0x1], 1 }

</bundles_post_ra>
